<compile_context>
chip_gen: v5e
topology: v5e:2x2
jax: 0.10.0
libtpu: 0.0.40
codegen_flags: <defaults>
</compile_context>

<pallas_src>
import jax
import jax.numpy as jnp
from jax.experimental import pallas as pl
from jax.experimental.pallas import tpu as pltpu


def transform_kernel(x_ref, w1_ref, b1_ref, w2_ref, b2_ref, o_ref):
    # x_ref : (TM, D2)  f32   activation row-tile (D2 = dim*dim = 625)
    # w1_ref: (D2, Dh)  bf16  Linear1 weight, hidden dim padded to Dh = 640
    # b1_ref: (1,  Dh)  f32
    # w2_ref: (Dh, D2)  bf16  Linear2 weight (padded rows are exactly zero)
    # b2_ref: (1,  D2)  f32
    # o_ref : (TM, D2)  f32
    x = x_ref[...].astype(jnp.bfloat16)                       # bf16 MXU feed
    h = jnp.dot(x, w1_ref[...], preferred_element_type=jnp.float32) + b1_ref[...]
    h = jnp.maximum(h, 0.0).astype(jnp.bfloat16)              # ReLU, bf16 feed
    y = jnp.dot(h, w2_ref[...], preferred_element_type=jnp.float32) + b2_ref[...]
    o_ref[...] = jnp.maximum(y, 0.0).astype(o_ref.dtype)      # ReLU


def prepare_params(w1, b1, w2, b2, dim, lane=128):
    """One-time weight prep (outside the hot path).

    Pads only the *hidden* feature dim 625 -> 640 (5*128 lanes) so the
    intermediate activation and the dominant weight DMA stay lane-dense, and
    casts the weights to bf16.  Padded w1 columns / b1 entries are zero
    (=> padded hidden lanes are ReLU(0) = 0) and padded w2 rows are zero, so
    real outputs are uncontaminated.  This invariant must be preserved by any
    future fp8/int8 re-preparation.
    """
    D2 = dim * dim
    Dh = lane * pl.cdiv(D2, lane)                  # 625 -> 640
    pad = Dh - D2
    # stored as (in_features, out_features): y = x @ W + b
    w1_p = jnp.pad(w1, ((0, 0), (0, pad))).astype(jnp.bfloat16)     # (D2, Dh)
    b1_p = jnp.pad(b1, (0, pad)).reshape(1, Dh).astype(jnp.float32)  # (1, Dh)
    w2_p = jnp.pad(w2, ((0, pad), (0, 0))).astype(jnp.bfloat16)     # (Dh, D2)
    b2_p = b2.reshape(1, D2).astype(jnp.float32)                     # (1, D2)
    return w1_p, b1_p, w2_p, b2_p


def transform_module_forward(x, w1_p, b1_p, w2_p, b2_p, dim):
    """x: (B, C, dim, dim) f32; prepared params -> (B, C, dim, dim) f32."""
    B, C = x.shape[0], x.shape[1]
    D2 = dim * dim
    Dh = w1_p.shape[1]
    M = B * C

    x_flat = x.reshape(M, D2)        # view-equivalent reshape; no pad/slice HLOs

    # Row tiling: a single full-extent tile for small M; 256-row tiles otherwise
    # so the VMEM-resident weights amortize over many activation tiles and the
    # "parallel" M axis can shard across TensorCores (v7x megacore).
    block_m = M if M <= 512 else 256
    grid = (pl.cdiv(M, block_m),)

    cost = pl.CostEstimate(
        flops=4 * M * D2 * Dh,                       # two matmuls
        transcendentals=0,
        bytes_accessed=2 * D2 * Dh * 2               # bf16 weights (dominant)
        + (Dh + D2) * 4                              # biases
        + 2 * M * D2 * 4,                            # x + out
    )

    out = pl.pallas_call(
        transform_kernel,
        out_shape=jax.ShapeDtypeStruct((M, D2), jnp.float32),
        grid=grid,
        in_specs=[
            pl.BlockSpec((block_m, D2), lambda i: (i, 0)),  # activations: per row-tile
            pl.BlockSpec((D2, Dh), lambda i: (0, 0)),       # weights: DMA once, stay resident
            pl.BlockSpec((1, Dh), lambda i: (0, 0)),
            pl.BlockSpec((Dh, D2), lambda i: (0, 0)),
            pl.BlockSpec((1, D2), lambda i: (0, 0)),
        ],
        out_specs=pl.BlockSpec((block_m, D2), lambda i: (i, 0)),
        compiler_params=pltpu.CompilerParams(
            dimension_semantics=("parallel",),
            vmem_limit_bytes=16 << 20,   # footprint ~3.5 MB; safe on v5e/v6e/v7x
        ),
        cost_estimate=cost,
    )(x_flat, w1_p, b1_p, w2_p, b2_p)

    return out.reshape(B, C, dim, dim)


def init_params(key, dim):
    """Deterministic init mimicking nn.Linear's U(-1/sqrt(in), 1/sqrt(in))."""
    D2 = dim * dim
    bound = 1.0 / (D2 ** 0.5)
    k1, k2, k3, k4 = jax.random.split(key, 4)
    # stored as (in_features, out_features)
    w1 = jax.random.uniform(k1, (D2, D2), jnp.float32, -bound, bound)
    b1 = jax.random.uniform(k2, (D2,), jnp.float32, -bound, bound)
    w2 = jax.random.uniform(k3, (D2, D2), jnp.float32, -bound, bound)
    b2 = jax.random.uniform(k4, (D2,), jnp.float32, -bound, bound)
    return w1, b1, w2, b2


if __name__ == "__main__":
    dim = 25            # module default: dim*dim = 625 features
    B, C = 2, 4

    key = jax.random.PRNGKey(0)
    k_x, k_p = jax.random.split(key)
    x = jax.random.normal(k_x, (B, C, dim, dim), jnp.float32)
    w1, b1, w2, b2 = init_params(k_p, dim)

    # one-time weight prep (hidden dim 625 -> 640, cast to bf16)
    w1_p, b1_p, w2_p, b2_p = prepare_params(w1, b1, w2, b2, dim)

    fwd = jax.jit(transform_module_forward, static_argnums=(5,))
    out = fwd(x, w1_p, b1_p, w2_p, b2_p, dim)
    out = jax.block_until_ready(out)
    assert out.shape == (B, C, dim, dim)

    x_flat = x.reshape(B, C, dim * dim)

    # (a) reference mirroring the kernel's bf16-weight arithmetic (tight check)
    xb = x_flat.astype(jnp.bfloat16).astype(jnp.float32)
    w1b = w1.astype(jnp.bfloat16).astype(jnp.float32)
    w2b = w2.astype(jnp.bfloat16).astype(jnp.float32)
    h_bf = jnp.maximum(xb @ w1b + b1, 0.0).astype(jnp.bfloat16).astype(jnp.float32)
    y_bf = jnp.maximum(h_bf @ w2b + b2, 0.0).reshape(B, C, dim, dim)
    assert jnp.allclose(out, y_bf, atol=5e-3, rtol=5e-3), float(jnp.max(jnp.abs(out - y_bf)))

    # (b) pure-f32 PyTorch-equivalent reference (relaxed: bf16 weight streaming)
    h32 = jnp.maximum(x_flat @ w1 + b1, 0.0)
    y32 = jnp.maximum(h32 @ w2 + b2, 0.0).reshape(B, C, dim, dim)
    assert jnp.allclose(out, y32, atol=5e-2, rtol=5e-2), float(jnp.max(jnp.abs(out - y32)))

    print("KERNEL_OK")
</pallas_src>

<mosaic_0001>
module attributes {stable_mosaic.version = 11 : i64} {
  func.func @transform_kernel(%arg0: i32, %arg1: memref<8x625xf32, #tpu.memory_space<vmem>>, %arg2: memref<625x640xbf16, #tpu.memory_space<vmem>>, %arg3: memref<1x640xf32, #tpu.memory_space<vmem>>, %arg4: memref<640x625xbf16, #tpu.memory_space<vmem>>, %arg5: memref<1x625xf32, #tpu.memory_space<vmem>>, %arg6: memref<8x625xf32, #tpu.memory_space<vmem>>) attributes {dimension_semantics = [#tpu.dimension_semantics<parallel>], iteration_bounds = array<i64: 1>, scalar_prefetch = 0 : i64, scratch_operands = 0 : i64, tpu.core_type = #tpu.core_type<tc>, window_params = [{transform_indices = @transform_0, window_bounds = array<i64: 8, 625>}, {pipeline_mode = #tpu.pipeline_mode<synchronous>, transform_indices = @transform_1, window_bounds = array<i64: 625, 640>}, {pipeline_mode = #tpu.pipeline_mode<synchronous>, transform_indices = @transform_2, window_bounds = array<i64: 1, 640>}, {pipeline_mode = #tpu.pipeline_mode<synchronous>, transform_indices = @transform_3, window_bounds = array<i64: 640, 625>}, {pipeline_mode = #tpu.pipeline_mode<synchronous>, transform_indices = @transform_4, window_bounds = array<i64: 1, 625>}, {transform_indices = @transform_5, window_bounds = array<i64: 8, 625>}]} {
    %c0 = arith.constant 0 : index
    %c0_0 = arith.constant 0 : index
    %0 = vector.load %arg1[%c0, %c0_0] : memref<8x625xf32, #tpu.memory_space<vmem>>, vector<8x625xf32>
    %1 = arith.truncf %0 : vector<8x625xf32> to vector<8x625xbf16>
    %c0_1 = arith.constant 0 : index
    %c0_2 = arith.constant 0 : index
    %2 = vector.load %arg2[%c0_1, %c0_2] : memref<625x640xbf16, #tpu.memory_space<vmem>>, vector<625x640xbf16>
    %cst = arith.constant dense<0.000000e+00> : vector<8x640xf32>
    %3 = tpu.matmul %1, %2, %cst {dimension_numbers = #tpu.dot_dimension_numbers<[1], [0], [0], [1], [0, 0, 1, 1], [], []>} : vector<8x625xbf16>, vector<625x640xbf16>, vector<8x640xf32> -> vector<8x640xf32>
    %c0_3 = arith.constant 0 : index
    %c0_4 = arith.constant 0 : index
    %4 = vector.load %arg3[%c0_3, %c0_4] : memref<1x640xf32, #tpu.memory_space<vmem>>, vector<1x640xf32>
    %5 = vector.broadcast %4 : vector<1x640xf32> to vector<8x640xf32>
    %6 = arith.addf %3, %5 : vector<8x640xf32>
    %cst_5 = arith.constant 0.000000e+00 : f32
    %7 = vector.broadcast %cst_5 : f32 to vector<8x640xf32>
    %8 = arith.maximumf %6, %7 : vector<8x640xf32>
    %9 = arith.truncf %8 : vector<8x640xf32> to vector<8x640xbf16>
    %c0_6 = arith.constant 0 : index
    %c0_7 = arith.constant 0 : index
    %10 = vector.load %arg4[%c0_6, %c0_7] : memref<640x625xbf16, #tpu.memory_space<vmem>>, vector<640x625xbf16>
    %cst_8 = arith.constant dense<0.000000e+00> : vector<8x625xf32>
    %11 = tpu.matmul %9, %10, %cst_8 {dimension_numbers = #tpu.dot_dimension_numbers<[1], [0], [0], [1], [0, 0, 1, 1], [], []>} : vector<8x640xbf16>, vector<640x625xbf16>, vector<8x625xf32> -> vector<8x625xf32>
    %c0_9 = arith.constant 0 : index
    %c0_10 = arith.constant 0 : index
    %12 = vector.load %arg5[%c0_9, %c0_10] : memref<1x625xf32, #tpu.memory_space<vmem>>, vector<1x625xf32>
    %13 = vector.broadcast %12 : vector<1x625xf32> to vector<8x625xf32>
    %14 = arith.addf %11, %13 : vector<8x625xf32>
    %cst_11 = arith.constant 0.000000e+00 : f32
    %15 = vector.broadcast %cst_11 : f32 to vector<8x625xf32>
    %16 = arith.maximumf %14, %15 : vector<8x625xf32>
    %c0_12 = arith.constant 0 : index
    %c0_13 = arith.constant 0 : index
    %17 = vector.load %arg6[%c0_12, %c0_13] : memref<8x625xf32, #tpu.memory_space<vmem>>, vector<8x625xf32>
    tpu.vector_store %arg6[%c0_12, %c0_13], %16 {strides = array<i32>} : memref<8x625xf32, #tpu.memory_space<vmem>>, vector<8x625xf32>,
    return
  }
  func.func @transform_0(%arg0: i32) -> (i32, i32) {
    %c0_i32 = arith.constant 0 : i32
    %c0_i32_0 = arith.constant 0 : i32
    return %arg0, %c0_i32 : i32, i32
  }
  func.func @transform_1(%arg0: i32) -> (i32, i32) {
    %c0_i32 = arith.constant 0 : i32
    %c0_i32_0 = arith.constant 0 : i32
    %c0_i32_1 = arith.constant 0 : i32
    return %c0_i32, %c0_i32_0 : i32, i32
  }
  func.func @transform_2(%arg0: i32) -> (i32, i32) {
    %c0_i32 = arith.constant 0 : i32
    %c0_i32_0 = arith.constant 0 : i32
    %c0_i32_1 = arith.constant 0 : i32
    return %c0_i32, %c0_i32_0 : i32, i32
  }
  func.func @transform_3(%arg0: i32) -> (i32, i32) {
    %c0_i32 = arith.constant 0 : i32
    %c0_i32_0 = arith.constant 0 : i32
    %c0_i32_1 = arith.constant 0 : i32
    return %c0_i32, %c0_i32_0 : i32, i32
  }
  func.func @transform_4(%arg0: i32) -> (i32, i32) {
    %c0_i32 = arith.constant 0 : i32
    %c0_i32_0 = arith.constant 0 : i32
    %c0_i32_1 = arith.constant 0 : i32
    return %c0_i32, %c0_i32_0 : i32, i32
  }
  func.func @transform_5(%arg0: i32) -> (i32, i32) {
    %c0_i32 = arith.constant 0 : i32
    %c0_i32_0 = arith.constant 0 : i32
    return %arg0, %c0_i32 : i32, i32
  }
}

</mosaic_0001>

<bundles_post_ra>
// kernel: transform_module_forward.1
= control target key start
LH: loop header
LB: loop body
LE: loop exit
PB: predicated region body
PF: predicated region fallthrough
CT: control target
= control target key end

     0   :  { %vm1310_vm0 = vcmask 1040384   ;;  %vm1306_vm1 = vcmask 924672   ;;  %s7869_s1 = inlined_call_operand.vmem [shape: bf16[625,640], index: 1, kind: input, shape index: {}]   ;;  %s7870_s0 = inlined_call_operand.vmem [shape: f32[8,625], index: 0, kind: input, shape index: {}]   ;;  %s7871_s3 = inlined_call_operand.vmem [shape: bf16[640,625], index: 3, kind: input, shape index: {}]   ;;  %s7872_s2 = inlined_call_operand.vmem [shape: f32[1,640], index: 2, kind: input, shape index: {}]   ;;  %s7873_s4 = inlined_call_operand.vmem [shape: f32[1,625], index: 4, kind: input, shape index: {}]   ;;  %s7874_s5 = inlined_call_operand.vmem [shape: f32[8,625], index: 5, kind: output, shape index: {}]  }
   0x1   :  { %v3436_v0 = vld [vmem:[%s7869_s1 + $0x118] sm:$0xf]  ;;  %v4916_v1 = vld [vmem:[%s7869_s1 + $0x128] sm:$0xf0]  ;;  %v3416_v11 = vld [vmem:[%s7869_s1 + $0xf0] sm:$0xf] }
   0x2   :  { %v3596_v2 = vld [vmem:[%s7869_s1 + $0x258] sm:$0xf]  ;;  %v3437_v3 = vor.u32 %v4916_v1, %v3436_v0  ;;  %v4956_v4 = vld [vmem:[%s7869_s1 + $0x268] sm:$0xf0]  ;;  %v4911_v13 = vld [vmem:[%s7869_s1 + $0x100] sm:$0xf0] }
   0x3   :  { %v3756_v5 = vld [vmem:[%s7869_s1 + $0x398] sm:$0xf]  ;;  %v4996_v6 = vld [vmem:[%s7869_s1 + $0x3a8] sm:$0xf0]  ;;  %v3597_v7 = vor.u32 %v4956_v4, %v3596_v2  ;;  %v3576_v14 = vld [vmem:[%s7869_s1 + $0x230] sm:$0xf]  ;;  %v3417_v16 = vor.u32 %v4911_v13, %v3416_v11 }
   0x4   :  { %v3757_v8 = vor.u32 %v4996_v6, %v3756_v5  ;;  %v3916_v9 = vld [vmem:[%s7869_s1 + $0x4d8] sm:$0xf]  ;;  %v5036_v10 = vld [vmem:[%s7869_s1 + $0x4e8] sm:$0xf0]  ;;  %1328 = vmatpush.bf16.msra.mxu0 %v3437_v3  ;;  %v4951_v15 = vld [vmem:[%s7869_s1 + $0x240] sm:$0xf0] }
   0x5   :  { %v3917_v12 = vor.u32 %v5036_v10, %v3916_v9  ;;  %1341 = vmatpush.bf16.msra.mxu1 %v3597_v7  ;;  %v3577_v17 = vor.u32 %v4951_v15, %v3576_v14  ;;  %v3736_v18 = vld [vmem:[%s7869_s1 + $0x370] sm:$0xf]  ;;  %v4991_v19 = vld [vmem:[%s7869_s1 + $0x380] sm:$0xf0]  ;;  %v3396_v23 = vld [vmem:[%s7869_s1 + $0xc8] sm:$0xf] }
   0x6   :  { %1354 = vmatpush.bf16.msra.mxu2 %v3757_v8  ;;  %v3896_v20 = vld [vmem:[%s7869_s1 + $0x4b0] sm:$0xf]  ;;  %v3737_v21 = vor.u32 %v4991_v19, %v3736_v18  ;;  %v5031_v22 = vld [vmem:[%s7869_s1 + $0x4c0] sm:$0xf0]  ;;  %v4906_v24 = vld [vmem:[%s7869_s1 + $0xd8] sm:$0xf0] }
   0x7   :  { %1367 = vmatpush.bf16.msra.mxu3 %v3917_v12  ;;  %v3897_v25 = vor.u32 %v5031_v22, %v3896_v20  ;;  %v3556_v26 = vld [vmem:[%s7869_s1 + $0x208] sm:$0xf]  ;;  %v4946_v27 = vld [vmem:[%s7869_s1 + $0x218] sm:$0xf0]  ;;  %v3397_v29 = vor.u32 %v4906_v24, %v3396_v23  ;;  %v3376_v35 = vld [vmem:[%s7869_s1 + $0xa0] sm:$0xf] }
   0x8   :  { %v3716_v28 = vld [vmem:[%s7869_s1 + $0x348] sm:$0xf]  ;;  %1329 = vmatpush.bf16.msra.mxu0 %v3417_v16  ;;  %v4986_v30 = vld [vmem:[%s7869_s1 + $0x358] sm:$0xf0]  ;;  %v3557_v33 = vor.u32 %v4946_v27, %v3556_v26  ;;  %v4901_v36 = vld [vmem:[%s7869_s1 + $0xb0] sm:$0xf0] }
   0x9   :  { %v3876_v31 = vld [vmem:[%s7869_s1 + $0x488] sm:$0xf]  ;;  %v5026_v32 = vld [vmem:[%s7869_s1 + $0x498] sm:$0xf0]  ;;  %1342 = vmatpush.bf16.msra.mxu1 %v3577_v17  ;;  %v3717_v34 = vor.u32 %v4986_v30, %v3716_v28  ;;  %v3536_v37 = vld [vmem:[%s7869_s1 + $0x1e0] sm:$0xf]  ;;  %v3377_v44 = vor.u32 %v4901_v36, %v3376_v35 }
   0xa   :  { %1355 = vmatpush.bf16.msra.mxu2 %v3737_v21  ;;  %v3877_v38 = vor.u32 %v5026_v32, %v3876_v31  ;;  %v4941_v39 = vld [vmem:[%s7869_s1 + $0x1f0] sm:$0xf0]  ;;  %v3696_v40 = vld [vmem:[%s7869_s1 + $0x320] sm:$0xf]  ;;  %v3356_v47 = vld [vmem:[%s7869_s1 + $0x78] sm:$0xf] }
   0xb   :  { %1368 = vmatpush.bf16.msra.mxu3 %v3897_v25  ;;  %v4981_v41 = vld [vmem:[%s7869_s1 + $0x330] sm:$0xf0]  ;;  %v3856_v42 = vld [vmem:[%s7869_s1 + $0x460] sm:$0xf]  ;;  %v3537_v45 = vor.u32 %v4941_v39, %v3536_v37  ;;  %v4896_v48 = vld [vmem:[%s7869_s1 + $0x88] sm:$0xf0] }
   0xc   :  { %v5021_v43 = vld [vmem:[%s7869_s1 + $0x470] sm:$0xf0]  ;;  %1330 = vmatpush.bf16.msra.mxu0 %v3397_v29  ;;  %v3697_v46 = vor.u32 %v4981_v41, %v3696_v40  ;;  %v3516_v49 = vld [vmem:[%s7869_s1 + $0x1b8] sm:$0xf]  ;;  %v4936_v51 = vld [vmem:[%s7869_s1 + $0x1c8] sm:$0xf0]  ;;  %v3357_v56 = vor.u32 %v4896_v48, %v3356_v47 }
   0xd   :  { %1343 = vmatpush.bf16.msra.mxu1 %v3557_v33  ;;  %v3857_v50 = vor.u32 %v5021_v43, %v3856_v42  ;;  %v3676_v52 = vld [vmem:[%s7869_s1 + $0x2f8] sm:$0xf]  ;;  %v4976_v53 = vld [vmem:[%s7869_s1 + $0x308] sm:$0xf0]  ;;  %v3517_v57 = vor.u32 %v4936_v51, %v3516_v49  ;;  %v3336_v59 = vld [vmem:[%s7869_s1 + $0x50] sm:$0xf] }
   0xe   :  { %1356 = vmatpush.bf16.msra.mxu2 %v3717_v34  ;;  %v3836_v54 = vld [vmem:[%s7869_s1 + $0x438] sm:$0xf]  ;;  %v5016_v55 = vld [vmem:[%s7869_s1 + $0x448] sm:$0xf0]  ;;  %v3677_v58 = vor.u32 %v4976_v53, %v3676_v52  ;;  %v4891_v60 = vld [vmem:[%s7869_s1 + $0x60] sm:$0xf0] }
   0xf   :  { %1369 = vmatpush.bf16.msra.mxu3 %v3877_v38  ;;  %v3496_v61 = vld [vmem:[%s7869_s1 + $0x190] sm:$0xf]  ;;  %v3837_v62 = vor.u32 %v5016_v55, %v3836_v54  ;;  %v4931_v63 = vld [vmem:[%s7869_s1 + $0x1a0] sm:$0xf0]  ;;  %v3337_v4 = vor.u32 %v4891_v60, %v3336_v59  ;;  %v3316_v5 = vld [vmem:[%s7869_s1 + $0x28] sm:$0xf] }
  0x10   :  { %1331 = vmatpush.bf16.msra.mxu0 %v3377_v44  ;;  %v3656_v0 = vld [vmem:[%s7869_s1 + $0x2d0] sm:$0xf]  ;;  %v4971_v1 = vld [vmem:[%s7869_s1 + $0x2e0] sm:$0xf0]  ;;  %v3497_v6 = vor.u32 %v4931_v63, %v3496_v61  ;;  %v4886_v8 = vld [vmem:[%s7869_s1 + $0x38] sm:$0xf0] }
  0x11   :  { %1344 = vmatpush.bf16.msra.mxu1 %v3537_v45  ;;  %v3816_v2 = vld [vmem:[%s7869_s1 + $0x410] sm:$0xf]  ;;  %v5011_v3 = vld [vmem:[%s7869_s1 + $0x420] sm:$0xf0]  ;;  %v3657_v7 = vor.u32 %v4971_v1, %v3656_v0  ;;  %v3476_v9 = vld [vmem:[%s7869_s1 + $0x168] sm:$0xf]  ;;  %v3317_v18 = vor.u32 %v4886_v8, %v3316_v5 }
  0x12   :  { %1357 = vmatpush.bf16.msra.mxu2 %v3697_v46  ;;  %v5463_v10 = vld [vmem:[%s7869_s1 + $0x618] sm:$0x11]  ;;  %v3817_v11 = vor.u32 %v5011_v3, %v3816_v2  ;;  %v3636_v13 = vld [vmem:[%s7869_s1 + $0x2a8] sm:$0xf]  ;;  %v3296_v19 = vld [vmem:[%s7869_s1] sm:$0xf] }
  0x13   :  { %1370 = vmatpush.bf16.msra.mxu3 %v3857_v50  ;;  %v4926_v12 = vld [vmem:[%s7869_s1 + $0x178] sm:$0xf0]  ;;  %v906_v15 = vunpack.c.l.b16 %v5463_v10  ;;  %v3796_v16 = vld [vmem:[%s7869_s1 + $0x3e8] sm:$0xf]  ;;  %v4881_v22 = vld [vmem:[%s7869_s1 + $0x10] sm:$0xf0] }
  0x14   :  { %1332 = vmatpush.bf16.msra.mxu0 %v3357_v56  ;;  %v4966_v14 = vld [vmem:[%s7869_s1 + $0x2b8] sm:$0xf0]  ;;  %v3477_v20 = vor.u32 %v4926_v12, %v3476_v9  ;;  %v3456_v23 = vld [vmem:[%s7869_s1 + $0x140] sm:$0xf]  ;;  %v4921_v24 = vld [vmem:[%s7869_s1 + $0x150] sm:$0xf0]  ;;  %v3297_v34 = vor.u32 %v4881_v22, %v3296_v19 }
  0x15   :  { %1345 = vmatpush.bf16.msra.mxu1 %v3517_v57  ;;  %v5006_v17 = vld [vmem:[%s7869_s1 + $0x3f8] sm:$0xf0]  ;;  %v3637_v21 = vor.u32 %v4966_v14, %v3636_v13  ;;  %v3616_v26 = vld [vmem:[%s7869_s1 + $0x280] sm:$0xf]  ;;  %v4961_v27 = vld [vmem:[%s7869_s1 + $0x290] sm:$0xf0]  ;;  %v1106_v28 = vpack.c.b16 %v906_v15, %v906_v15  ;;  %v3457_v38 = vor.u32 %v4921_v24, %v3456_v23 }
  0x16   :  { %1358 = vmatpush.bf16.msra.mxu2 %v3677_v58  ;;  %v3797_v25 = vor.u32 %v5006_v17, %v3796_v16  ;;  %v5276_v29 = vmov 0   ;;  %v4914_v31 = vld [vmem:[%s7869_s1 + $0x11c] sm:$0xf]  ;;  %v3438_v32 = vld [vmem:[%s7869_s1 + $0x12c] sm:$0xf0]  ;;  %v3617_v39 = vor.u32 %v4961_v27, %v3616_v26  ;;  %v20_v42 = vld [vmem:[%s7870_s0] sm:$0xff] }
  0x17   :  { %1371 = vmatpush.bf16.msra.mxu3 %v3837_v62  ;;  %v5500_v30 = vsel %vm1310_vm0, 65535, %v5276_v29  ;;  %v4954_v33 = vld [vmem:[%s7869_s1 + $0x25c] sm:$0xf]  ;;  %v3598_v35 = vld [vmem:[%s7869_s1 + $0x26c] sm:$0xf0]  ;;  %v3441_v44 = vor.u32 %v4914_v31, %v3438_v32  ;;  %v5548_v54 = vpack.c.bf16 %v20_v42, %v20_v42  ;;  %v21_v27 = vld [vmem:[%s7870_s0 + $0x8] sm:$0xff] }
  0x18   :  { %1333 = vmatpush.bf16.msra.mxu0 %v3337_v4  ;;  %v3776_v36 = vld [vmem:[%s7869_s1 + $0x3c0] sm:$0xf]  ;;  %v5001_v37 = vld [vmem:[%s7869_s1 + $0x3d0] sm:$0xf0]  ;;  %v4994_v40 = vld [vmem:[%s7869_s1 + $0x39c] sm:$0xf]  ;;  %v1314_v43 = vand.u32 %v5500_v30, %v1106_v28  ;;  %v3601_v46 = vor.u32 %v4954_v33, %v3598_v35  ;;  %v5635_v33 = vpack.c.bf16 %v21_v27, %v21_v27 }
  0x19   :  { %1346 = vmatpush.bf16.msra.mxu1 %v3497_v6  ;;  %v3758_v41 = vld [vmem:[%s7869_s1 + $0x3ac] sm:$0xf0]  ;;  %v3777_v47 = vor.u32 %v5001_v37, %v3776_v36  ;;  %v5071_v48 = vld [vmem:[%s7869_s1 + $0x600] sm:$0xf0]  ;;  %v4909_v49 = vld [vmem:[%s7869_s1 + $0xf4] sm:$0xf] }
  0x1a   :  { %1359 = vmatpush.bf16.msra.mxu2 %v3657_v7  ;;  %v4056_v45 = vld [vmem:[%s7869_s1 + $0x5f0] sm:$0xf]  ;;  %v3418_v50 = vld [vmem:[%s7869_s1 + $0x104] sm:$0xf0]  ;;  %v3761_v51 = vor.u32 %v4994_v40, %v3758_v41  ;;  %v4949_v52 = vld [vmem:[%s7869_s1 + $0x234] sm:$0xf] }
  0x1b   :  { %1372 = vmatpush.bf16.msra.mxu3 %v3817_v11  ;;  %v3578_v53 = vld [vmem:[%s7869_s1 + $0x244] sm:$0xf0]  ;;  %v4989_v55 = vld [vmem:[%s7869_s1 + $0x374] sm:$0xf]  ;;  %v4057_v57 = vor.u32 %v5071_v48, %v4056_v45  ;;  %v3421_v58 = vor.u32 %v4909_v49, %v3418_v50  ;;  %v5066_v61 = vld [vmem:[%s7869_s1 + $0x5d8] sm:$0xf0] }
  0x1c   :  { %1334 = vmatpush.bf16.msra.mxu0 %v3317_v18  ;;  %v3738_v56 = vld [vmem:[%s7869_s1 + $0x384] sm:$0xf0]  ;;  %v3581_v60 = vor.u32 %v4949_v52, %v3578_v53  ;;  %v4904_v62 = vld [vmem:[%s7869_s1 + $0xcc] sm:$0xf]  ;;  %v3398_v63 = vld [vmem:[%s7869_s1 + $0xdc] sm:$0xf0] }
  0x1d   :  { %1347 = vmatpush.bf16.msra.mxu1 %v3477_v20  ;;  %v4036_v59 = vld [vmem:[%s7869_s1 + $0x5c8] sm:$0xf]  ;;  %v3741_v0 = vor.u32 %v4989_v55, %v3738_v56  ;;  %v4944_v1 = vld [vmem:[%s7869_s1 + $0x20c] sm:$0xf]  ;;  %v3558_v2 = vld [vmem:[%s7869_s1 + $0x21c] sm:$0xf0]  ;;  %v3401_v6 = vor.u32 %v4904_v62, %v3398_v63 }
  0x1e   :  { %1360 = vmatpush.bf16.msra.mxu2 %v3637_v21  ;;  %v4984_v3 = vld [vmem:[%s7869_s1 + $0x34c] sm:$0xf]  ;;  %v3718_v4 = vld [vmem:[%s7869_s1 + $0x35c] sm:$0xf0]  ;;  %v4037_v5 = vor.u32 %v5066_v61, %v4036_v59  ;;  %v3561_v8 = vor.u32 %v4944_v1, %v3558_v2  ;;  %v5061_v9 = vld [vmem:[%s7869_s1 + $0x5b0] sm:$0xf0] }
  0x1f   :  { %1373 = vmatpush.bf16.msra.mxu3 %v3797_v25  ;;  %v4016_v7 = vld [vmem:[%s7869_s1 + $0x5a0] sm:$0xf]  ;;  %v4899_v11 = vld [vmem:[%s7869_s1 + $0xa4] sm:$0xf]  ;;  %v3378_v12 = vld [vmem:[%s7869_s1 + $0xb4] sm:$0xf0]  ;;  %v3721_v13 = vor.u32 %v4984_v3, %v3718_v4 }
  0x20   :  { %1335 = vmatpush.bf16.msra.mxu0 %v3297_v34  ;;  %v4939_v14 = vld [vmem:[%s7869_s1 + $0x1e4] sm:$0xf]  ;;  %v3538_v15 = vld [vmem:[%s7869_s1 + $0x1f4] sm:$0xf0]  ;;  %v22_v18 = vld [vmem:[%s7870_s0 + $0x10] sm:$0xff]  ;;  %v4017_v19 = vor.u32 %v5061_v9, %v4016_v7  ;;  %v3381_v20 = vor.u32 %v4899_v11, %v3378_v12 }
  0x21   :  { %1348 = vmatpush.bf16.msra.mxu1 %v3457_v38  ;;  %v4979_v16 = vld [vmem:[%s7869_s1 + $0x324] sm:$0xf]  ;;  %v3698_v17 = vld [vmem:[%s7869_s1 + $0x334] sm:$0xf0]  ;;  %v5056_v22 = vld [vmem:[%s7869_s1 + $0x588] sm:$0xf0]  ;;  %v5617_v24 = vpack.c.bf16 %v22_v18, %v22_v18  ;;  %v3541_v25 = vor.u32 %v4939_v14, %v3538_v15 }
  0x22   :  { %1361 = vmatpush.bf16.msra.mxu2 %v3617_v39  ;;  %v3996_v21 = vld [vmem:[%s7869_s1 + $0x578] sm:$0xf]  ;;  %v4894_v23 = vld [vmem:[%s7869_s1 + $0x7c] sm:$0xf]  ;;  %v3358_v26 = vld [vmem:[%s7869_s1 + $0x8c] sm:$0xf0]  ;;  %v3701_v29 = vor.u32 %v4979_v16, %v3698_v17 }
  0x23   :  { %1374 = vmatpush.bf16.msra.mxu3 %v3777_v47  ;;  %1336 = vmatmul.bf16.vlgmr.msra.gmra.mxu0 %v5548_v54  ;;  %v23_v28 = vld [vmem:[%s7870_s0 + $0x18] sm:$0xff]  ;;  %v3518_v32 = vld [vmem:[%s7869_s1 + $0x1cc] sm:$0xf0]  ;;  %v3997_v37 = vor.u32 %v5056_v22, %v3996_v21  ;;  %v3361_v38 = vor.u32 %v4894_v23, %v3358_v26  ;;  %v5051_v41 = vld [vmem:[%s7869_s1 + $0x560] sm:$0xf0] }
  0x24   :  { %1380 = vmatpush.bf16.msrb.mxu0 %v1314_v43  ;;  %v4934_v31 = vld [vmem:[%s7869_s1 + $0x1bc] sm:$0xf]  ;;  %v3678_v35 = vld [vmem:[%s7869_s1 + $0x30c] sm:$0xf0]  ;;  %v5643_v36 = vpack.c.bf16 %v23_v28, %v23_v28  ;;  %v4889_v42 = vld [vmem:[%s7869_s1 + $0x54] sm:$0xf]  ;;  %1349 = vmatmul.bf16.vlgmr.msra.gmra.mxu1 %v5635_v33 }
  0x25   :  { %1393 = vmatpush.bf16.msrb.mxu1 %v3441_v44  ;;  %1362 = vmatmul.bf16.vlgmr.msra.gmra.mxu2 %v5617_v24  ;;  %v4974_v34 = vld [vmem:[%s7869_s1 + $0x2fc] sm:$0xf]  ;;  %v3976_v39 = vld [vmem:[%s7869_s1 + $0x550] sm:$0xf]  ;;  %v3521_v40 = vor.u32 %v4934_v31, %v3518_v32  ;;  %v3338_v43 = vld [vmem:[%s7869_s1 + $0x64] sm:$0xf0] }
  0x26   :  { %1406 = vmatpush.bf16.msrb.mxu2 %v3601_v46  ;;  %v3681_v44 = vor.u32 %v4974_v34, %v3678_v35  ;;  %v4929_v45 = vld [vmem:[%s7869_s1 + $0x194] sm:$0xf]  ;;  %v3498_v46 = vld [vmem:[%s7869_s1 + $0x1a4] sm:$0xf0]  ;;  %1375 = vmatmul.bf16.vlgmr.msra.gmra.mxu3 %v5643_v36  ;;  %v3977_v49 = vor.u32 %v5051_v41, %v3976_v39  ;;  %v3341_v50 = vor.u32 %v4889_v42, %v3338_v43  ;;  %v5046_v53 = vld [vmem:[%s7869_s1 + $0x538] sm:$0xf0] }
  0x27   :  { %1419 = vmatpush.bf16.msrb.mxu3 %v3761_v51  ;;  %v4969_v47 = vld [vmem:[%s7869_s1 + $0x2d4] sm:$0xf]  ;;  %v3658_v48 = vld [vmem:[%s7869_s1 + $0x2e4] sm:$0xf0]  ;;  %v3501_v52 = vor.u32 %v4929_v45, %v3498_v46  ;;  %v4884_v55 = vld [vmem:[%s7869_s1 + $0x2c] sm:$0xf] }
  0x28   :  { %1381 = vmatpush.bf16.msrb.mxu0 %v4057_v57  ;;  %v3956_v51 = vld [vmem:[%s7869_s1 + $0x528] sm:$0xf]  ;;  %v3318_v56 = vld [vmem:[%s7869_s1 + $0x3c] sm:$0xf0]  ;;  %v907_v57 = vunpack.c.h.b16 %v5463_v10  ;;  %v4924_v59 = vld [vmem:[%s7869_s1 + $0x16c] sm:$0xf] }
  0x29   :  { %1394 = vmatpush.bf16.msrb.mxu1 %v3421_v58  ;;  %v3661_v58 = vor.u32 %v4969_v47, %v3658_v48  ;;  %v4964_v61 = vld [vmem:[%s7869_s1 + $0x2ac] sm:$0xf]  ;;  %v3638_v62 = vld [vmem:[%s7869_s1 + $0x2bc] sm:$0xf0]  ;;  %v3957_v10 = vor.u32 %v5046_v53, %v3956_v51  ;;  %v3321_v63 = vor.u32 %v4884_v55, %v3318_v56  ;;  %v5041_v1 = vld [vmem:[%s7869_s1 + $0x510] sm:$0xf0] }
  0x2a   :  { %1407 = vmatpush.bf16.msrb.mxu2 %v3581_v60  ;;  %v3478_v60 = vld [vmem:[%s7869_s1 + $0x17c] sm:$0xf0]  ;;  %v4879_v3 = vld [vmem:[%s7869_s1 + $0x4] sm:$0xf]  ;;  %v3298_v4 = vld [vmem:[%s7869_s1 + $0x14] sm:$0xf0]  ;;  %v3641_v7 = vor.u32 %v4964_v61, %v3638_v62 }
  0x2b   :  { %1420 = vmatpush.bf16.msrb.mxu3 %v3741_v0  ;;  %v3936_v0 = vld [vmem:[%s7869_s1 + $0x500] sm:$0xf]  ;;  %v3481_v2 = vor.u32 %v4924_v59, %v3478_v60  ;;  %v5034_v9 = vld [vmem:[%s7869_s1 + $0x4dc] sm:$0xf]  ;;  %v3918_v11 = vld [vmem:[%s7869_s1 + $0x4ec] sm:$0xf0]  ;;  %v3301_v15 = vor.u32 %v4879_v3, %v3298_v4 }
  0x2c   :  { %1382 = vmatpush.bf16.msrb.mxu0 %v4037_v5  ;;  %v4919_v5 = vld [vmem:[%s7869_s1 + $0x144] sm:$0xf]  ;;  %v3444_v12 = vld [vmem:[%s7869_s1 + $0x120] sm:$0xf]  ;;  %v3937_v14 = vor.u32 %v5041_v1, %v3936_v0  ;;  %v3618_v17 = vld [vmem:[%s7869_s1 + $0x294] sm:$0xf0] }
  0x2d   :  { %1395 = vmatpush.bf16.msrb.mxu1 %v3401_v6  ;;  %v1107_v6 = vpack.c.b16 %v907_v57, %v907_v57  ;;  %v4959_v16 = vld [vmem:[%s7869_s1 + $0x284] sm:$0xf]  ;;  %v3604_v21 = vld [vmem:[%s7869_s1 + $0x260] sm:$0xf]  ;;  %v4957_v22 = vld [vmem:[%s7869_s1 + $0x270] sm:$0xf0] }
  0x2e   :  { %1408 = vmatpush.bf16.msrb.mxu2 %v3561_v8  ;;  %v3458_v8 = vld [vmem:[%s7869_s1 + $0x154] sm:$0xf0]  ;;  %v24_v18 = vld [vmem:[%s7870_s0 + $0x20] sm:$0xff]  ;;  %v5029_v26 = vld [vmem:[%s7869_s1 + $0x4b4] sm:$0xf] }
  0x2f   :  { %1421 = vmatpush.bf16.msrb.mxu3 %v3721_v13  ;;  %v4917_v13 = vld [vmem:[%s7869_s1 + $0x130] sm:$0xf0]  ;;  %v1317_v23 = vand.u32 %v5500_v30, %v1107_v6  ;;  %v3898_v27 = vld [vmem:[%s7869_s1 + $0x4c4] sm:$0xf0]  ;;  %v3424_v32 = vld [vmem:[%s7869_s1 + $0xf8] sm:$0xf]  ;;  %v5760_v35 = vpack.c.bf16 %v24_v18, %v24_v18 }
  0x30   :  { %1383 = vmatpush.bf16.msrb.mxu0 %v4017_v19  ;;  %v3461_v19 = vor.u32 %v4919_v5, %v3458_v8  ;;  %v5069_v28 = vld [vmem:[%s7869_s1 + $0x5f4] sm:$0xf]  ;;  %v4058_v31 = vld [vmem:[%s7869_s1 + $0x604] sm:$0xf0]  ;;  %v4912_v34 = vld [vmem:[%s7869_s1 + $0x108] sm:$0xf0] }
  0x31   :  { %1396 = vmatpush.bf16.msrb.mxu1 %v3381_v20  ;;  %v3921_v20 = vor.u32 %v5034_v9, %v3918_v11  ;;  %v3584_v39 = vld [vmem:[%s7869_s1 + $0x238] sm:$0xf]  ;;  %v4061_v41 = vor.u32 %v5069_v28, %v4058_v31  ;;  %v3425_v42 = vor.u32 %v4912_v34, %v3424_v32  ;;  %v5024_v43 = vld [vmem:[%s7869_s1 + $0x48c] sm:$0xf]  ;;  %v4038_v46 = vld [vmem:[%s7869_s1 + $0x5dc] sm:$0xf0] }
  0x32   :  { %1409 = vmatpush.bf16.msrb.mxu2 %v3541_v25  ;;  %v3445_v25 = vor.u32 %v4917_v13, %v3444_v12  ;;  %v5064_v45 = vld [vmem:[%s7869_s1 + $0x5cc] sm:$0xf]  ;;  %v3404_v47 = vld [vmem:[%s7869_s1 + $0xd0] sm:$0xf]  ;;  %v4907_v48 = vld [vmem:[%s7869_s1 + $0xe0] sm:$0xf0] }
  0x33   :  { %1422 = vmatpush.bf16.msrb.mxu3 %v3701_v29  ;;  %v3621_v29 = vor.u32 %v4959_v16, %v3618_v17  ;;  %v3564_v51 = vld [vmem:[%s7869_s1 + $0x210] sm:$0xf]  ;;  %v4041_v53 = vor.u32 %v5064_v45, %v4038_v46  ;;  %v3405_v55 = vor.u32 %v4907_v48, %v3404_v47  ;;  %v5019_v56 = vld [vmem:[%s7869_s1 + $0x464] sm:$0xf]  ;;  %v3858_v57 = vld [vmem:[%s7869_s1 + $0x474] sm:$0xf0] }
  0x34   :  { %1384 = vmatpush.bf16.msrb.mxu0 %v3997_v37  ;;  %v3605_v37 = vor.u32 %v4957_v22, %v3604_v21  ;;  %v4018_v59 = vld [vmem:[%s7869_s1 + $0x5b4] sm:$0xf0]  ;;  %v3384_v60 = vld [vmem:[%s7869_s1 + $0xa8] sm:$0xf]  ;;  %v4902_v61 = vld [vmem:[%s7869_s1 + $0xb8] sm:$0xf0] }
  0x35   :  { %1397 = vmatpush.bf16.msrb.mxu1 %v3361_v38  ;;  %v3901_v38 = vor.u32 %v5029_v26, %v3898_v27  ;;  %v4942_v0 = vld [vmem:[%s7869_s1 + $0x1f8] sm:$0xf0]  ;;  %v3838_v4 = vld [vmem:[%s7869_s1 + $0x44c] sm:$0xf0]  ;;  %v4897_v8 = vld [vmem:[%s7869_s1 + $0x90] sm:$0xf0] }
  0x36   :  { %1410 = vmatpush.bf16.msrb.mxu2 %v3521_v40  ;;  %v4952_v40 = vld [vmem:[%s7869_s1 + $0x248] sm:$0xf0]  ;;  %v5014_v3 = vld [vmem:[%s7869_s1 + $0x43c] sm:$0xf]  ;;  %v3998_v6 = vld [vmem:[%s7869_s1 + $0x58c] sm:$0xf0] }
  0x37   :  { %1423 = vmatpush.bf16.msrb.mxu3 %v3681_v44  ;;  %v3878_v44 = vld [vmem:[%s7869_s1 + $0x49c] sm:$0xf0]  ;;  %v5054_v5 = vld [vmem:[%s7869_s1 + $0x57c] sm:$0xf]  ;;  %v3841_v11 = vor.u32 %v5014_v3, %v3838_v4  ;;  %v4937_v13 = vld [vmem:[%s7869_s1 + $0x1d0] sm:$0xf0] }
  0x38   :  { %1385 = vmatpush.bf16.msrb.mxu0 %v3977_v49  ;;  %v3585_v49 = vor.u32 %v4952_v40, %v3584_v39  ;;  %v3524_v12 = vld [vmem:[%s7869_s1 + $0x1c0] sm:$0xf]  ;;  %v5009_v16 = vld [vmem:[%s7869_s1 + $0x414] sm:$0xf]  ;;  %v3818_v17 = vld [vmem:[%s7869_s1 + $0x424] sm:$0xf0] }
  0x39   :  { %1398 = vmatpush.bf16.msrb.mxu1 %v3341_v50  ;;  %v3881_v50 = vor.u32 %v5024_v43, %v3878_v44  ;;  %v5049_v18 = vld [vmem:[%s7869_s1 + $0x554] sm:$0xf]  ;;  %v4892_v21 = vld [vmem:[%s7869_s1 + $0x68] sm:$0xf0]  ;;  %v3525_v22 = vor.u32 %v4937_v13, %v3524_v12  ;;  %v5872_v27 = vld [vmem:[%s7869_s1 + $0x620] sm:$0x11] }
  0x3a   :  { %1411 = vmatpush.bf16.msrb.mxu2 %v3501_v52  ;;  %v4947_v52 = vld [vmem:[%s7869_s1 + $0x220] sm:$0xf0]  ;;  %v4932_v26 = vld [vmem:[%s7869_s1 + $0x1a8] sm:$0xf0]  ;;  %v3798_v32 = vld [vmem:[%s7869_s1 + $0x3fc] sm:$0xf0] }
  0x3b   :  { %1424 = vmatpush.bf16.msrb.mxu3 %v3661_v58  ;;  %v5059_v58 = vld [vmem:[%s7869_s1 + $0x5a4] sm:$0xf]  ;;  %v3565_v62 = vor.u32 %v4947_v52, %v3564_v51  ;;  %v5004_v31 = vld [vmem:[%s7869_s1 + $0x3ec] sm:$0xf]  ;;  %v3484_v43 = vld [vmem:[%s7869_s1 + $0x170] sm:$0xf] }
  0x3c   :  { %1386 = vmatpush.bf16.msrb.mxu0 %v3957_v10  ;;  %v3861_v10 = vor.u32 %v5019_v56, %v3858_v57  ;;  %v4021_v1 = vor.u32 %v5059_v58, %v4018_v59  ;;  %v5044_v34 = vld [vmem:[%s7869_s1 + $0x52c] sm:$0xf]  ;;  %v4887_v39 = vld [vmem:[%s7869_s1 + $0x40] sm:$0xf0]  ;;  %v3778_v48 = vld [vmem:[%s7869_s1 + $0x3d4] sm:$0xf0] }
  0x3d   :  { %1399 = vmatpush.bf16.msrb.mxu1 %v3321_v63  ;;  %v3544_v63 = vld [vmem:[%s7869_s1 + $0x1e8] sm:$0xf]  ;;  %v4927_v44 = vld [vmem:[%s7869_s1 + $0x180] sm:$0xf0]  ;;  %v4882_v52 = vld [vmem:[%s7869_s1 + $0x18] sm:$0xf0] }
  0x3e   :  { %1412 = vmatpush.bf16.msrb.mxu2 %v3481_v2  ;;  %v3385_v2 = vor.u32 %v4902_v61, %v3384_v60  ;;  %v3545_v9 = vor.u32 %v4942_v0, %v3544_v63  ;;  %v4999_v45 = vld [vmem:[%s7869_s1 + $0x3c4] sm:$0xf]  ;;  %v3304_v51 = vld [vmem:[%s7869_s1 + $0x8] sm:$0xf]  ;;  %v4997_v56 = vld [vmem:[%s7869_s1 + $0x3b0] sm:$0xf0] }
  0x3f   :  { %1425 = vmatpush.bf16.msrb.mxu3 %v3641_v7  ;;  %v3364_v7 = vld [vmem:[%s7869_s1 + $0x80] sm:$0xf]  ;;  %v5037_v58 = vld [vmem:[%s7869_s1 + $0x4f0] sm:$0xf0]  ;;  %v3781_v60 = vor.u32 %v4999_v45, %v3778_v48  ;;  %v3464_v61 = vld [vmem:[%s7869_s1 + $0x148] sm:$0xf]  ;;  %v3305_v63 = vor.u32 %v4882_v52, %v3304_v51 }
  0x40   :  { %1387 = vmatpush.bf16.msrb.mxu0 %v3937_v14  ;;  %v4001_v14 = vor.u32 %v5054_v5, %v3998_v6  ;;  %v3924_v57 = vld [vmem:[%s7869_s1 + $0x4e0] sm:$0xf]  ;;  %v4915_v0 = vld [vmem:[%s7869_s1 + $0x124] sm:$0xf]  ;;  %v3744_v4 = vld [vmem:[%s7869_s1 + $0x378] sm:$0xf] }
  0x41   :  { %1400 = vmatpush.bf16.msrb.mxu1 %v3301_v15  ;;  %v3365_v15 = vor.u32 %v4897_v8, %v3364_v7  ;;  %v3925_v3 = vor.u32 %v5037_v58, %v3924_v57  ;;  %v4992_v7 = vld [vmem:[%s7869_s1 + $0x388] sm:$0xf0]  ;;  %v3904_v8 = vld [vmem:[%s7869_s1 + $0x4b8] sm:$0xf]  ;;  %v3386_v45 = vld [vmem:[%s7869_s1 + $0xbc] sm:$0xf0] }
  0x42   :  { %1413 = vmatpush.bf16.msrb.mxu2 %v3461_v19  ;;  %v3978_v19 = vld [vmem:[%s7869_s1 + $0x564] sm:$0xf0]  ;;  %v4064_v12 = vld [vmem:[%s7869_s1 + $0x5f8] sm:$0xf]  ;;  %v5072_v13 = vld [vmem:[%s7869_s1 + $0x608] sm:$0xf0] }
  0x43   :  { %1426 = vmatpush.bf16.msrb.mxu3 %v3621_v29  ;;  %4074 = vmatmul.msk.bf16.vlgmr.msrb.gmra.mxu0 %vm1306_vm1, %v5760_v35  ;;  %v3981_v28 = vor.u32 %v5049_v18, %v3978_v19  ;;  %v3724_v18 = vld [vmem:[%s7869_s1 + $0x350] sm:$0xf]  ;;  %v4065_v19 = vor.u32 %v5072_v13, %v4064_v12  ;;  %v3684_v48 = vld [vmem:[%s7869_s1 + $0x300] sm:$0xf]  ;;  %v5017_v52 = vld [vmem:[%s7869_s1 + $0x450] sm:$0xf0] }
  0x44   :  { %1432 = vmatpush.bf16.msra.mxu0 %v3921_v20  ;;  %1401 = vmatmul.bf16.vlgmr.msrb.gmra.mxu1 %v5548_v54  ;;  %v3344_v20 = vld [vmem:[%s7869_s1 + $0x58] sm:$0xf]  ;;  %v3844_v51 = vld [vmem:[%s7869_s1 + $0x440] sm:$0xf]  ;;  %v4895_v57 = vld [vmem:[%s7869_s1 + $0x84] sm:$0xf] }
  0x45   :  { %1445 = vmatpush.bf16.msra.mxu1 %v1317_v23  ;;  %1414 = vmatmul.bf16.vlgmr.msrb.gmra.mxu2 %v5635_v33  ;;  %v3821_v23 = vor.u32 %v5009_v16, %v3818_v17  ;;  %v3345_v29 = vor.u32 %v4892_v21, %v3344_v20  ;;  %v3745_v16 = vor.u32 %v4992_v7, %v3744_v4  ;;  %v4987_v20 = vld [vmem:[%s7869_s1 + $0x360] sm:$0xf0]  ;;  %v3884_v21 = vld [vmem:[%s7869_s1 + $0x490] sm:$0xf]  ;;  %v3366_v58 = vld [vmem:[%s7869_s1 + $0x94] sm:$0xf0] }
  0x46   :  { %1458 = vmatpush.bf16.msra.mxu2 %v3445_v25  ;;  %1427 = vmatmul.bf16.vlgmr.msrb.gmra.mxu3 %v5617_v24  ;;  %v3504_v25 = vld [vmem:[%s7869_s1 + $0x198] sm:$0xf]  ;;  %v4890_v4 = vld [vmem:[%s7869_s1 + $0x5c] sm:$0xf]  ;;  %v3804_v12 = vld [vmem:[%s7869_s1 + $0x3f0] sm:$0xf] }
  0x47   :  { %1471 = vmatpush.bf16.msra.mxu3 %v3605_v37  ;;  %v3958_v37 = vld [vmem:[%s7869_s1 + $0x53c] sm:$0xf0]  ;;  %v3505_v40 = vor.u32 %v4932_v26, %v3504_v25  ;;  %v4044_v25 = vld [vmem:[%s7869_s1 + $0x5d0] sm:$0xf]  ;;  %v5067_v26 = vld [vmem:[%s7869_s1 + $0x5e0] sm:$0xf0] }
  0x48   :  { %1433 = vmatpush.bf16.msra.mxu0 %v3901_v38  ;;  %v3324_v38 = vld [vmem:[%s7869_s1 + $0x30] sm:$0xf]  ;;  %v3961_v46 = vor.u32 %v5044_v34, %v3958_v37  ;;  %v3704_v34 = vld [vmem:[%s7869_s1 + $0x328] sm:$0xf]  ;;  %v4045_v37 = vor.u32 %v5067_v26, %v4044_v25  ;;  %v5007_v13 = vld [vmem:[%s7869_s1 + $0x400] sm:$0xf0]  ;;  %v909_v25 = vunpack.c.h.b16 %v5872_v27 }
  0x49   :  { %1446 = vmatpush.bf16.msra.mxu1 %v4061_v41  ;;  %v908_v41 = vunpack.c.l.b16 %v5872_v27  ;;  %v3325_v47 = vor.u32 %v4887_v39, %v3324_v38  ;;  %v4982_v38 = vld [vmem:[%s7869_s1 + $0x338] sm:$0xf0]  ;;  %v3864_v39 = vld [vmem:[%s7869_s1 + $0x468] sm:$0xf]  ;;  %v4955_v27 = vld [vmem:[%s7869_s1 + $0x264] sm:$0xf] }
  0x4a   :  { %1459 = vmatpush.bf16.msra.mxu2 %v3425_v42  ;;  %v3801_v42 = vor.u32 %v5004_v31, %v3798_v32  ;;  %v3725_v31 = vor.u32 %v4987_v20, %v3724_v18  ;;  %v3326_v18 = vld [vmem:[%s7869_s1 + $0x44] sm:$0xf0]  ;;  %v3805_v20 = vor.u32 %v5007_v13, %v3804_v12  ;;  %v4940_v12 = vld [vmem:[%s7869_s1 + $0x1ec] sm:$0xf]  ;;  %v3546_v13 = vld [vmem:[%s7869_s1 + $0x1fc] sm:$0xf0] }
  0x4b   :  { %1472 = vmatpush.bf16.msra.mxu3 %v3585_v49  ;;  %v5039_v49 = vld [vmem:[%s7869_s1 + $0x504] sm:$0xf]  ;;  %v1108_v59 = vpack.c.b16 %v908_v41, %v908_v41 }
  0x4c   :  { %1434 = vmatpush.bf16.msra.mxu0 %v3881_v50  ;;  %v3938_v50 = vld [vmem:[%s7869_s1 + $0x514] sm:$0xf0] }
  0x4d   :  { %1447 = vmatpush.bf16.msra.mxu1 %v4041_v53  ;;  %v3764_v53 = vld [vmem:[%s7869_s1 + $0x3a0] sm:$0xf]  ;;  %v1320_v5 = vand.u32 %v5500_v30, %v1108_v59 }
  0x4e   :  { %1460 = vmatpush.bf16.msra.mxu2 %v3405_v55  ;;  %v3485_v55 = vor.u32 %v4927_v44, %v3484_v43  ;;  %v5062_v43 = vld [vmem:[%s7869_s1 + $0x5b8] sm:$0xf0]  ;;  %v4900_v44 = vld [vmem:[%s7869_s1 + $0xac] sm:$0xf] }
  0x4f   :  { %1473 = vmatpush.bf16.msra.mxu3 %v3565_v62  ;;  %v4922_v62 = vld [vmem:[%s7869_s1 + $0x158] sm:$0xf0] }
  0x50   :  { %1435 = vmatpush.bf16.msra.mxu0 %v3861_v10  ;;  %v3941_v10 = vor.u32 %v5039_v49, %v3938_v50  ;;  %v3465_v6 = vor.u32 %v4922_v62, %v3464_v61  ;;  %v4977_v50 = vld [vmem:[%s7869_s1 + $0x310] sm:$0xf0]  ;;  %v3664_v61 = vld [vmem:[%s7869_s1 + $0x2d8] sm:$0xf] }
  0x51   :  { %1448 = vmatpush.bf16.msra.mxu1 %v4021_v1  ;;  %v3446_v1 = vld [vmem:[%s7869_s1 + $0x134] sm:$0xf0]  ;;  %v3685_v59 = vor.u32 %v4977_v50, %v3684_v48  ;;  %v4950_v50 = vld [vmem:[%s7869_s1 + $0x23c] sm:$0xf] }
  0x52   :  { %1461 = vmatpush.bf16.msra.mxu2 %v3385_v2  ;;  %v3765_v2 = vor.u32 %v4997_v56, %v3764_v53  ;;  %v3389_v53 = vor.u32 %v4900_v44, %v3386_v45  ;;  %v5057_v56 = vld [vmem:[%s7869_s1 + $0x590] sm:$0xf0]  ;;  %v3306_v44 = vld [vmem:[%s7869_s1 + $0x1c] sm:$0xf0]  ;;  %v1109_v45 = vpack.c.b16 %v909_v25, %v909_v25  ;;  %v4935_v25 = vld [vmem:[%s7869_s1 + $0x1c4] sm:$0xf] }
  0x53   :  { %1474 = vmatpush.bf16.msra.mxu3 %v3545_v9  ;;  %v5032_v9 = vld [vmem:[%s7869_s1 + $0x4c8] sm:$0xf0] }
  0x54   :  { %1436 = vmatpush.bf16.msra.mxu0 %v3841_v11  ;;  %v3449_v11 = vor.u32 %v4915_v0, %v3446_v1  ;;  %v3905_v17 = vor.u32 %v5032_v9, %v3904_v8  ;;  %v5012_v0 = vld [vmem:[%s7869_s1 + $0x428] sm:$0xf0]  ;;  %v3369_v1 = vor.u32 %v4895_v57, %v3366_v58  ;;  %v3644_v8 = vld [vmem:[%s7869_s1 + $0x2b0] sm:$0xf]  ;;  %v1323_v58 = vand.u32 %v5500_v30, %v1109_v45  ;;  %v5010_v45 = vld [vmem:[%s7869_s1 + $0x41c] sm:$0xf] }
  0x55   :  { %1449 = vmatpush.bf16.msra.mxu1 %v4001_v14  ;;  %v4910_v14 = vld [vmem:[%s7869_s1 + $0xfc] sm:$0xf]  ;;  %v3906_v57 = vld [vmem:[%s7869_s1 + $0x4cc] sm:$0xf0] }
  0x56   :  { %1462 = vmatpush.bf16.msra.mxu2 %v3365_v15  ;;  %v3426_v15 = vld [vmem:[%s7869_s1 + $0x10c] sm:$0xf0] }
  0x57   :  { %1475 = vmatpush.bf16.msra.mxu3 %v3525_v22  ;;  %v5027_v22 = vld [vmem:[%s7869_s1 + $0x4a0] sm:$0xf0] }
  0x58   :  { %1437 = vmatpush.bf16.msra.mxu0 %v3821_v23  ;;  %v3429_v23 = vor.u32 %v4910_v14, %v3426_v15  ;;  %v3885_v32 = vor.u32 %v5027_v22, %v3884_v21  ;;  %v3964_v15 = vld [vmem:[%s7869_s1 + $0x530] sm:$0xf]  ;;  %v3624_v21 = vld [vmem:[%s7869_s1 + $0x288] sm:$0xf]  ;;  %v4962_v22 = vld [vmem:[%s7869_s1 + $0x298] sm:$0xf0] }
  0x59   :  { %1450 = vmatpush.bf16.msra.mxu1 %v3981_v28  ;;  %v4905_v28 = vld [vmem:[%s7869_s1 + $0xd4] sm:$0xf] }
  0x5a   :  { %1463 = vmatpush.bf16.msra.mxu2 %v3345_v29  ;;  %v3406_v29 = vld [vmem:[%s7869_s1 + $0xe4] sm:$0xf0] }
  0x5b   :  { %1476 = vmatpush.bf16.msra.mxu3 %v3505_v40  ;;  %v5022_v40 = vld [vmem:[%s7869_s1 + $0x478] sm:$0xf0]  ;;  %v3409_v41 = vor.u32 %v4905_v28, %v3406_v29  ;;  %v3944_v29 = vld [vmem:[%s7869_s1 + $0x508] sm:$0xf] }
  0x5c   :  { %1438 = vmatpush.bf16.msra.mxu0 %v3801_v42  ;;  %v4024_v42 = vld [vmem:[%s7869_s1 + $0x5a8] sm:$0xf]  ;;  %v5002_v28 = vld [vmem:[%s7869_s1 + $0x3d8] sm:$0xf0] }
  0x5d   :  { %1451 = vmatpush.bf16.msra.mxu1 %v3961_v46  ;;  %v3705_v46 = vor.u32 %v4982_v38, %v3704_v34  ;;  %v4025_v49 = vor.u32 %v5062_v43, %v4024_v42  ;;  %v3606_v34 = vld [vmem:[%s7869_s1 + $0x274] sm:$0xf0]  ;;  %v4880_v43 = vld [vmem:[%s7869_s1 + $0xc] sm:$0xf] }
  0x5e   :  { %1464 = vmatpush.bf16.msra.mxu2 %v3325_v47  ;;  %v3865_v47 = vor.u32 %v5022_v40, %v3864_v39  ;;  %v3766_v38 = vld [vmem:[%s7869_s1 + $0x3b4] sm:$0xf0]  ;;  %v5035_v39 = vld [vmem:[%s7869_s1 + $0x4e4] sm:$0xf] }
  0x5f   :  { %1477 = vmatpush.bf16.msra.mxu3 %v3485_v55  ;;  %v4004_v55 = vld [vmem:[%s7869_s1 + $0x580] sm:$0xf]  ;;  %v3926_v40 = vld [vmem:[%s7869_s1 + $0x4f4] sm:$0xf0] }
  0x60   :  { %1439 = vmatpush.bf16.msra.mxu0 %v3781_v60  ;;  %v3845_v60 = vor.u32 %v5017_v52, %v3844_v51  ;;  %v4005_v62 = vor.u32 %v5057_v56, %v4004_v55  ;;  %v3586_v51 = vld [vmem:[%s7869_s1 + $0x24c] sm:$0xf0]  ;;  %v4990_v52 = vld [vmem:[%s7869_s1 + $0x37c] sm:$0xf] }
  0x61   :  { %1452 = vmatpush.bf16.msra.mxu1 %v3941_v10  ;;  %v4972_v10 = vld [vmem:[%s7869_s1 + $0x2e8] sm:$0xf0]  ;;  %v3746_v55 = vld [vmem:[%s7869_s1 + $0x38c] sm:$0xf0]  ;;  %v5030_v56 = vld [vmem:[%s7869_s1 + $0x4bc] sm:$0xf] }
  0x62   :  { %1465 = vmatpush.bf16.msra.mxu2 %v3305_v63  ;;  %v3824_v63 = vld [vmem:[%s7869_s1 + $0x418] sm:$0xf] }
  0x63   :  { %1478 = vmatpush.bf16.msra.mxu3 %v3465_v6  ;;  %1440 = vmatmul.bf16.vlgmr.msra.gmra.mxu0 %v5643_v36  ;;  %v3665_v6 = vor.u32 %v4972_v10, %v3664_v61  ;;  %v3825_v7 = vor.u32 %v5012_v0, %v3824_v63  ;;  %v4066_v61 = vld [vmem:[%s7869_s1 + $0x60c] sm:$0xf0]  ;;  %v3909_v10 = vor.u32 %v5030_v56, %v3906_v57  ;;  %v4945_v63 = vld [vmem:[%s7869_s1 + $0x214] sm:$0xf]  ;;  %v3566_v0 = vld [vmem:[%s7869_s1 + $0x224] sm:$0xf0] }
  0x64   :  { %1484 = vmatpush.bf16.msrb.mxu0 %v3765_v2  ;;  %4075 = vmatmul.msk.bf16.vlgmr.msra.gmra.mxu1 %vm1306_vm1, %v5760_v35  ;;  %v3984_v2 = vld [vmem:[%s7869_s1 + $0x558] sm:$0xf]  ;;  %v4965_v56 = vld [vmem:[%s7869_s1 + $0x2b4] sm:$0xf]  ;;  %v3646_v57 = vld [vmem:[%s7869_s1 + $0x2c4] sm:$0xf0] }
  0x65   :  { %1497 = vmatpush.bf16.msrb.mxu1 %v3925_v3  ;;  %1466 = vmatmul.bf16.vlgmr.msra.gmra.mxu2 %v5548_v54  ;;  %v5052_v3 = vld [vmem:[%s7869_s1 + $0x568] sm:$0xf0] }
  0x66   :  { %1510 = vmatpush.bf16.msrb.mxu2 %v1320_v5  ;;  %1479 = vmatmul.bf16.vlgmr.msra.gmra.mxu3 %v5635_v33  ;;  %v3346_v5 = vld [vmem:[%s7869_s1 + $0x6c] sm:$0xf0]  ;;  %v3985_v9 = vor.u32 %v5052_v3, %v3984_v2  ;;  %v3726_v2 = vld [vmem:[%s7869_s1 + $0x364] sm:$0xf0]  ;;  %v5025_v3 = vld [vmem:[%s7869_s1 + $0x494] sm:$0xf] }
  0x67   :  { %1523 = vmatpush.bf16.msrb.mxu3 %v3449_v11  ;;  %v4967_v11 = vld [vmem:[%s7869_s1 + $0x2c0] sm:$0xf0]  ;;  %v3349_v14 = vor.u32 %v4890_v4, %v3346_v5  ;;  %v3886_v4 = vld [vmem:[%s7869_s1 + $0x4a4] sm:$0xf0] }
  0x68   :  { %1485 = vmatpush.bf16.msrb.mxu0 %v3745_v16  ;;  %v5047_v16 = vld [vmem:[%s7869_s1 + $0x540] sm:$0xf0] }
  0x69   :  { %1498 = vmatpush.bf16.msrb.mxu1 %v3905_v17  ;;  %v4885_v17 = vld [vmem:[%s7869_s1 + $0x34] sm:$0xf]  ;;  %v3965_v26 = vor.u32 %v5047_v16, %v3964_v15  ;;  %v3706_v15 = vld [vmem:[%s7869_s1 + $0x33c] sm:$0xf0]  ;;  %v5020_v16 = vld [vmem:[%s7869_s1 + $0x46c] sm:$0xf] }
  0x6a   :  { %1511 = vmatpush.bf16.msrb.mxu2 %v4065_v19  ;;  %v3645_v19 = vor.u32 %v4967_v11, %v3644_v8  ;;  %v4046_v8 = vld [vmem:[%s7869_s1 + $0x5e4] sm:$0xf0]  ;;  %v3889_v11 = vor.u32 %v5025_v3, %v3886_v4  ;;  %v4960_v3 = vld [vmem:[%s7869_s1 + $0x28c] sm:$0xf]  ;;  %v3626_v4 = vld [vmem:[%s7869_s1 + $0x29c] sm:$0xf0] }
  0x6b   :  { %1524 = vmatpush.bf16.msrb.mxu3 %v3429_v23  ;;  %v3784_v23 = vld [vmem:[%s7869_s1 + $0x3c8] sm:$0xf] }
  0x6c   :  { %1486 = vmatpush.bf16.msrb.mxu0 %v3725_v31  ;;  %v5042_v31 = vld [vmem:[%s7869_s1 + $0x518] sm:$0xf0]  ;;  %v3785_v42 = vor.u32 %v5002_v28, %v3784_v23  ;;  %v4975_v28 = vld [vmem:[%s7869_s1 + $0x304] sm:$0xf] }
  0x6d   :  { %1499 = vmatpush.bf16.msrb.mxu1 %v3885_v32  ;;  %v3329_v32 = vor.u32 %v4885_v17, %v3326_v18  ;;  %v3866_v17 = vld [vmem:[%s7869_s1 + $0x47c] sm:$0xf0] }
  0x6e   :  { %1512 = vmatpush.bf16.msrb.mxu2 %v4045_v37  ;;  %v4995_v37 = vld [vmem:[%s7869_s1 + $0x3a4] sm:$0xf]  ;;  %v3869_v23 = vor.u32 %v5020_v16, %v3866_v17  ;;  %v3629_v16 = vor.u32 %v4960_v3, %v3626_v4  ;;  %v4898_v3 = vld [vmem:[%s7869_s1 + $0x98] sm:$0xf0] }
  0x6f   :  { %1525 = vmatpush.bf16.msrb.mxu3 %v3409_v41  ;;  %v3625_v41 = vor.u32 %v4962_v22, %v3624_v21  ;;  %v3769_v48 = vor.u32 %v4995_v37, %v3766_v38  ;;  %v4026_v21 = vld [vmem:[%s7869_s1 + $0x5bc] sm:$0xf0]  ;;  %v5055_v37 = vld [vmem:[%s7869_s1 + $0x584] sm:$0xf]  ;;  %v4006_v38 = vld [vmem:[%s7869_s1 + $0x594] sm:$0xf0] }
  0x70   :  { %1487 = vmatpush.bf16.msrb.mxu0 %v3705_v46  ;;  %v3945_v46 = vor.u32 %v5042_v31, %v3944_v29  ;;  %v3686_v29 = vld [vmem:[%s7869_s1 + $0x314] sm:$0xf0]  ;;  %v5015_v31 = vld [vmem:[%s7869_s1 + $0x444] sm:$0xf] }
  0x71   :  { %1500 = vmatpush.bf16.msrb.mxu1 %v3865_v47  ;;  %v3609_v47 = vor.u32 %v4955_v27, %v3606_v34 }
  0x72   :  { %1513 = vmatpush.bf16.msrb.mxu2 %v4025_v49  ;;  %v3929_v49 = vor.u32 %v5035_v39, %v3926_v40  ;;  %v3689_v39 = vor.u32 %v4975_v28, %v3686_v29  ;;  %v4913_v28 = vld [vmem:[%s7869_s1 + $0x110] sm:$0xf0]  ;;  %v3592_v29 = vld [vmem:[%s7869_s1 + $0x240] sm:$0xf] }
  0x73   :  { %1526 = vmatpush.bf16.msrb.mxu3 %v3389_v53  ;;  %v3309_v53 = vor.u32 %v4880_v43, %v3306_v44  ;;  %v4970_v43 = vld [vmem:[%s7869_s1 + $0x2dc] sm:$0xf]  ;;  %v3666_v44 = vld [vmem:[%s7869_s1 + $0x2ec] sm:$0xf0] }
  0x74   :  { %1488 = vmatpush.bf16.msrb.mxu0 %v3685_v59  ;;  %v3589_v59 = vor.u32 %v4950_v50, %v3586_v51  ;;  %v3986_v50 = vld [vmem:[%s7869_s1 + $0x56c] sm:$0xf0]  ;;  %v3669_v51 = vor.u32 %v4970_v43, %v3666_v44  ;;  %v4908_v43 = vld [vmem:[%s7869_s1 + $0xe8] sm:$0xf0]  ;;  %v3572_v44 = vld [vmem:[%s7869_s1 + $0x218] sm:$0xf] }
  0x75   :  { %1501 = vmatpush.bf16.msrb.mxu1 %v3845_v60  ;;  %v5070_v60 = vld [vmem:[%s7869_s1 + $0x5fc] sm:$0xf] }
  0x76   :  { %1514 = vmatpush.bf16.msrb.mxu2 %v4005_v62  ;;  %v3749_v62 = vor.u32 %v4990_v52, %v3746_v55  ;;  %v4069_v5 = vor.u32 %v5070_v60, %v4066_v61  ;;  %v3486_v55 = vld [vmem:[%s7869_s1 + $0x184] sm:$0xf0] }
  0x77   :  { %1527 = vmatpush.bf16.msrb.mxu3 %v3369_v1  ;;  %v4985_v1 = vld [vmem:[%s7869_s1 + $0x354] sm:$0xf] }
  0x78   :  { %1489 = vmatpush.bf16.msrb.mxu0 %v3665_v6  ;;  %v3569_v6 = vor.u32 %v4945_v63, %v3566_v0  ;;  %v4920_v63 = vld [vmem:[%s7869_s1 + $0x14c] sm:$0xf]  ;;  %v3649_v0 = vor.u32 %v4965_v56, %v3646_v57  ;;  %v4903_v56 = vld [vmem:[%s7869_s1 + $0xc0] sm:$0xf0]  ;;  %v3552_v57 = vld [vmem:[%s7869_s1 + $0x1f0] sm:$0xf] }
  0x79   :  { %1502 = vmatpush.bf16.msrb.mxu1 %v3825_v7  ;;  %v5065_v7 = vld [vmem:[%s7869_s1 + $0x5d4] sm:$0xf] }
  0x7a   :  { %1515 = vmatpush.bf16.msrb.mxu2 %v3985_v9  ;;  %v3729_v9 = vor.u32 %v4985_v1, %v3726_v2  ;;  %v4049_v18 = vor.u32 %v5065_v7, %v4046_v8  ;;  %v3466_v2 = vld [vmem:[%s7869_s1 + $0x15c] sm:$0xf0]  ;;  %v3452_v7 = vld [vmem:[%s7869_s1 + $0x128] sm:$0xf] }
  0x7b   :  { %1528 = vmatpush.bf16.msrb.mxu3 %v3349_v14  ;;  %v4980_v14 = vld [vmem:[%s7869_s1 + $0x32c] sm:$0xf] }
  0x7c   :  { %1490 = vmatpush.bf16.msrb.mxu0 %v3645_v19  ;;  %v3549_v19 = vor.u32 %v4940_v12, %v3546_v13  ;;  %v3709_v22 = vor.u32 %v4980_v14, %v3706_v15  ;;  %v4958_v12 = vld [vmem:[%s7869_s1 + $0x278] sm:$0xf0]  ;;  %v3469_v13 = vor.u32 %v4920_v63, %v3466_v2  ;;  %v5040_v14 = vld [vmem:[%s7869_s1 + $0x50c] sm:$0xf]  ;;  %v3946_v15 = vld [vmem:[%s7869_s1 + $0x51c] sm:$0xf0] }
  0x7d   :  { %1503 = vmatpush.bf16.msrb.mxu1 %v3805_v20  ;;  %v5060_v20 = vld [vmem:[%s7869_s1 + $0x5ac] sm:$0xf]  ;;  %v3872_v63 = vld [vmem:[%s7869_s1 + $0x470] sm:$0xf]  ;;  %v3372_v2 = vld [vmem:[%s7869_s1 + $0x88] sm:$0xf] }
  0x7e   :  { %1516 = vmatpush.bf16.msrb.mxu2 %v3965_v26  ;;  %v3526_v26 = vld [vmem:[%s7869_s1 + $0x1d4] sm:$0xf0]  ;;  %v4029_v27 = vor.u32 %v5060_v20, %v4026_v21  ;;  %v4998_v21 = vld [vmem:[%s7869_s1 + $0x3b8] sm:$0xf0] }
  0x7f   :  { %1529 = vmatpush.bf16.msrb.mxu3 %v3329_v32  ;;  %v3846_v32 = vld [vmem:[%s7869_s1 + $0x454] sm:$0xf0]  ;;  %v3529_v34 = vor.u32 %v4935_v25, %v3526_v26  ;;  %v3949_v25 = vor.u32 %v5040_v14, %v3946_v15  ;;  %v3432_v26 = vld [vmem:[%s7869_s1 + $0x100] sm:$0xf]  ;;  %v5018_v14 = vld [vmem:[%s7869_s1 + $0x458] sm:$0xf0] }
  0x80   :  { %1491 = vmatpush.bf16.msrb.mxu0 %v3625_v41  ;;  %v3849_v40 = vor.u32 %v5015_v31, %v3846_v32  ;;  %v4930_v41 = vld [vmem:[%s7869_s1 + $0x19c] sm:$0xf]  ;;  %v4953_v31 = vld [vmem:[%s7869_s1 + $0x250] sm:$0xf0] }
  0x81   :  { %1504 = vmatpush.bf16.msrb.mxu1 %v3785_v42  ;;  %v3506_v42 = vld [vmem:[%s7869_s1 + $0x1ac] sm:$0xf0] }
  0x82   :  { %1517 = vmatpush.bf16.msrb.mxu2 %v3945_v46  ;;  %v3826_v46 = vld [vmem:[%s7869_s1 + $0x42c] sm:$0xf0] }
  0x83   :  { %1530 = vmatpush.bf16.msrb.mxu3 %v3309_v53  ;;  %1492 = vmatmul.bf16.vlgmr.msrb.gmra.mxu0 %v5617_v24  ;;  %v3829_v52 = vor.u32 %v5010_v45, %v3826_v46  ;;  %v4925_v53 = vld [vmem:[%s7869_s1 + $0x174] sm:$0xf]  ;;  %v4948_v45 = vld [vmem:[%s7869_s1 + $0x228] sm:$0xf0] }
  0x84   :  { %1536 = vmatpush.bf16.msra.mxu0 %v3609_v47  ;;  %1505 = vmatmul.bf16.vlgmr.msrb.gmra.mxu1 %v5643_v36  ;;  %v4009_v47 = vor.u32 %v5055_v37, %v4006_v38  ;;  %v3489_v61 = vor.u32 %v4925_v53, %v3486_v55  ;;  %v3433_v37 = vor.u32 %v4913_v28, %v3432_v26  ;;  %v4993_v38 = vld [vmem:[%s7869_s1 + $0x390] sm:$0xf0]  ;;  %v3392_v55 = vld [vmem:[%s7869_s1 + $0xb0] sm:$0xf]  ;;  %v3832_v28 = vld [vmem:[%s7869_s1 + $0x420] sm:$0xf] }
  0x85   :  { %1549 = vmatpush.bf16.msra.mxu1 %v3769_v48  ;;  %4076 = vmatmul.msk.bf16.vlgmr.msrb.gmra.mxu2 %vm1306_vm1, %v5760_v35  ;;  %v3509_v48 = vor.u32 %v4930_v41, %v3506_v42  ;;  %v3593_v41 = vor.u32 %v4953_v31, %v3592_v29  ;;  %v3412_v42 = vld [vmem:[%s7869_s1 + $0xd8] sm:$0xf]  ;;  %v3573_v53 = vor.u32 %v4948_v45, %v3572_v44  ;;  %v4973_v26 = vld [vmem:[%s7869_s1 + $0x2f0] sm:$0xf0]  ;;  %v4968_v44 = vld [vmem:[%s7869_s1 + $0x2c8] sm:$0xf0] }
  0x86   :  { %1562 = vmatpush.bf16.msra.mxu2 %v3929_v49  ;;  %1531 = vmatmul.bf16.vlgmr.msrb.gmra.mxu3 %v5548_v54  ;;  %v5050_v49 = vld [vmem:[%s7869_s1 + $0x55c] sm:$0xf]  ;;  %v5013_v29 = vld [vmem:[%s7869_s1 + $0x430] sm:$0xf0]  ;;  %v3812_v45 = vld [vmem:[%s7869_s1 + $0x3f8] sm:$0xf] }
  0x87   :  { %1575 = vmatpush.bf16.msra.mxu3 %v1323_v58  ;;  %v5005_v58 = vld [vmem:[%s7869_s1 + $0x3f4] sm:$0xf]  ;;  %v3989_v60 = vor.u32 %v5050_v49, %v3986_v50  ;;  %v3413_v49 = vor.u32 %v4908_v43, %v3412_v42  ;;  %v4988_v50 = vld [vmem:[%s7869_s1 + $0x368] sm:$0xf0]  ;;  %v3833_v42 = vor.u32 %v5013_v29, %v3832_v28  ;;  %v5101_v28 = vld [vmem:[%s7871_s3 + $0xd8] sm:$0xf0] }
  0x88   :  { %1537 = vmatpush.bf16.msra.mxu0 %v3589_v59  ;;  %v3806_v59 = vld [vmem:[%s7869_s1 + $0x404] sm:$0xf0] }
  0x89   :  { %1550 = vmatpush.bf16.msra.mxu1 %v3749_v62  ;;  %v5045_v62 = vld [vmem:[%s7869_s1 + $0x534] sm:$0xf]  ;;  %v3809_v1 = vor.u32 %v5005_v58, %v3806_v59  ;;  %v4943_v58 = vld [vmem:[%s7869_s1 + $0x200] sm:$0xf0] }
  0x8a   :  { %1563 = vmatpush.bf16.msra.mxu2 %v3909_v10  ;;  %v3966_v10 = vld [vmem:[%s7869_s1 + $0x544] sm:$0xf0] }
  0x8b   :  { %1576 = vmatpush.bf16.msra.mxu3 %v4069_v5  ;;  %v5000_v5 = vld [vmem:[%s7869_s1 + $0x3cc] sm:$0xf]  ;;  %v3969_v8 = vor.u32 %v5045_v62, %v3966_v10  ;;  %v3393_v62 = vor.u32 %v4903_v56, %v3392_v55  ;;  %v4983_v10 = vld [vmem:[%s7869_s1 + $0x340] sm:$0xf0]  ;;  %v4221_v56 = vld [vmem:[%s7871_s3 + $0x118] sm:$0xf] }
  0x8c   :  { %1538 = vmatpush.bf16.msra.mxu0 %v3569_v6  ;;  %v3786_v6 = vld [vmem:[%s7869_s1 + $0x3dc] sm:$0xf0] }
  0x8d   :  { %1551 = vmatpush.bf16.msra.mxu1 %v3729_v9  ;;  %v4918_v9 = vld [vmem:[%s7869_s1 + $0x138] sm:$0xf0]  ;;  %v3789_v17 = vor.u32 %v5000_v5, %v3786_v6  ;;  %v3532_v5 = vld [vmem:[%s7869_s1 + $0x1c8] sm:$0xf] }
  0x8e   :  { %1564 = vmatpush.bf16.msra.mxu2 %v3889_v11  ;;  %v3612_v11 = vld [vmem:[%s7869_s1 + $0x268] sm:$0xf]  ;;  %v4938_v6 = vld [vmem:[%s7869_s1 + $0x1d8] sm:$0xf0] }
  0x8f   :  { %1577 = vmatpush.bf16.msra.mxu3 %v4049_v18  ;;  %v3772_v18 = vld [vmem:[%s7869_s1 + $0x3a8] sm:$0xf]  ;;  %v3613_v20 = vor.u32 %v4958_v12, %v3612_v11  ;;  %v3373_v11 = vor.u32 %v4898_v3, %v3372_v2  ;;  %v4978_v12 = vld [vmem:[%s7869_s1 + $0x318] sm:$0xf0]  ;;  %v3533_v15 = vor.u32 %v4938_v6, %v3532_v5  ;;  %v3792_v2 = vld [vmem:[%s7869_s1 + $0x3d0] sm:$0xf] }
  0x90   :  { %1539 = vmatpush.bf16.msra.mxu0 %v3549_v19  ;;  %v3453_v19 = vor.u32 %v4918_v9, %v3452_v7  ;;  %v3773_v32 = vor.u32 %v4998_v21, %v3772_v18  ;;  %v3512_v18 = vld [vmem:[%s7869_s1 + $0x1a0] sm:$0xf]  ;;  %v5003_v3 = vld [vmem:[%s7869_s1 + $0x3e0] sm:$0xf0] }
  0x91   :  { %1552 = vmatpush.bf16.msra.mxu1 %v3709_v22  ;;  %v3932_v22 = vld [vmem:[%s7869_s1 + $0x4e8] sm:$0xf]  ;;  %v4072_v6 = vld [vmem:[%s7869_s1 + $0x600] sm:$0xf] }
  0x92   :  { %1565 = vmatpush.bf16.msra.mxu2 %v3869_v23  ;;  %v5038_v23 = vld [vmem:[%s7869_s1 + $0x4f8] sm:$0xf0] }
  0x93   :  { %1578 = vmatpush.bf16.msra.mxu3 %v4029_v27  ;;  %v3752_v27 = vld [vmem:[%s7869_s1 + $0x380] sm:$0xf] }
  0x94   :  { %1540 = vmatpush.bf16.msra.mxu0 %v3529_v34  ;;  %v3933_v34 = vor.u32 %v5038_v23, %v3932_v22  ;;  %v3753_v46 = vor.u32 %v4993_v38, %v3752_v27  ;;  %v3672_v22 = vld [vmem:[%s7869_s1 + $0x2e0] sm:$0xf]  ;;  %v4888_v27 = vld [vmem:[%s7869_s1 + $0x48] sm:$0xf0]  ;;  %v3492_v38 = vld [vmem:[%s7869_s1 + $0x178] sm:$0xf] }
  0x95   :  { %1553 = vmatpush.bf16.msra.mxu1 %v3689_v39  ;;  %v3912_v39 = vld [vmem:[%s7869_s1 + $0x4c0] sm:$0xf] }
  0x96   :  { %1566 = vmatpush.bf16.msra.mxu2 %v3849_v40  ;;  %v5033_v40 = vld [vmem:[%s7869_s1 + $0x4d0] sm:$0xf0] }
  0x97   :  { %1579 = vmatpush.bf16.msra.mxu3 %v4009_v47  ;;  %v3732_v47 = vld [vmem:[%s7869_s1 + $0x358] sm:$0xf] }
  0x98   :  { %1541 = vmatpush.bf16.msra.mxu0 %v3509_v48  ;;  %v3913_v48 = vor.u32 %v5033_v40, %v3912_v39  ;;  %v3733_v59 = vor.u32 %v4988_v50, %v3732_v47  ;;  %v4928_v39 = vld [vmem:[%s7869_s1 + $0x188] sm:$0xf0]  ;;  %v3673_v40 = vor.u32 %v4973_v26, %v3672_v22  ;;  %v4883_v50 = vld [vmem:[%s7869_s1 + $0x20] sm:$0xf0]  ;;  %v4181_v26 = vld [vmem:[%s7871_s3 + $0xc8] sm:$0xf] }
  0x99   :  { %1554 = vmatpush.bf16.msra.mxu1 %v3669_v51  ;;  %v3892_v51 = vld [vmem:[%s7869_s1 + $0x498] sm:$0xf] }
  0x9a   :  { %1567 = vmatpush.bf16.msra.mxu2 %v3829_v52  ;;  %v5028_v52 = vld [vmem:[%s7869_s1 + $0x4a8] sm:$0xf0] }
  0x9b   :  { %1580 = vmatpush.bf16.msra.mxu3 %v3989_v60  ;;  %v3712_v60 = vld [vmem:[%s7869_s1 + $0x330] sm:$0xf] }
  0x9c   :  { %1542 = vmatpush.bf16.msra.mxu0 %v3489_v61  ;;  %v3893_v61 = vor.u32 %v5028_v52, %v3892_v51  ;;  %v3713_v7 = vor.u32 %v4983_v10, %v3712_v60  ;;  %v3472_v52 = vld [vmem:[%s7869_s1 + $0x150] sm:$0xf]  ;;  %v4381_v10 = vld [vmem:[%s7871_s3 + $0x258] sm:$0xf] }
  0x9d   :  { %1555 = vmatpush.bf16.msra.mxu1 %v3649_v0  ;;  %v5023_v0 = vld [vmem:[%s7869_s1 + $0x480] sm:$0xf0] }
  0x9e   :  { %1568 = vmatpush.bf16.msra.mxu2 %v3809_v1  ;;  %v3553_v1 = vor.u32 %v4943_v58, %v3552_v57  ;;  %v3873_v9 = vor.u32 %v5023_v0, %v3872_v63  ;;  %v5111_v57 = vld [vmem:[%s7871_s3 + $0x128] sm:$0xf0] }
  0x9f   :  { %1581 = vmatpush.bf16.msra.mxu3 %v3969_v8  ;;  %v3692_v8 = vld [vmem:[%s7869_s1 + $0x308] sm:$0xf]  ;;  %v4222_v5 = vor.u32 %v5111_v57, %v4221_v56  ;;  %v4141_v56 = vld [vmem:[%s7871_s3 + $0x78] sm:$0xf]  ;;  %v5091_v57 = vld [vmem:[%s7871_s3 + $0x88] sm:$0xf0] }
  0xa0   :  { %1543 = vmatpush.bf16.msra.mxu0 %v3469_v13  ;;  %v6415_v4 = vpop.f32.mrf.mxu0  ;;  %v3852_v13 = vld [vmem:[%s7869_s1 + $0x448] sm:$0xf]  ;;  %v3693_v21 = vor.u32 %v4978_v12, %v3692_v8 }
  0xa1   :  { %1556 = vmatpush.bf16.msra.mxu1 %v3629_v16  ;;  %v3352_v16 = vld [vmem:[%s7869_s1 + $0x60] sm:$0xf]  ;;  %v3853_v23 = vor.u32 %v5018_v14, %v3852_v13  ;;  %v6486_v47 = vpop.f32.mrf.mxu1  ;;  %v4361_v13 = vld [vmem:[%s7871_s3 + $0x230] sm:$0xf]  ;;  %v3793_v14 = vor.u32 %v5003_v3, %v3792_v2  ;;  %v4142_v2 = vor.u32 %v5091_v57, %v4141_v56  ;;  %v5226_v57 = vld [vmem:[%s7871_s3 + $0x4c0] sm:$0xf0] }
  0xa2   :  { %1569 = vmatpush.bf16.msra.mxu2 %v3789_v17  ;;  %v4893_v17 = vld [vmem:[%s7869_s1 + $0x70] sm:$0xf0]  ;;  %v3992_v3 = vld [vmem:[%s7869_s1 + $0x560] sm:$0xf]  ;;  %v4681_v56 = vld [vmem:[%s7871_s3 + $0x4b0] sm:$0xf] }
  0xa3   :  { %1582 = vmatpush.bf16.msra.mxu3 %v3949_v25  ;;  %1544 = vmatmul.bf16.vlgmr.msra.gmra.mxu0 %v5635_v33  ;;  %v3353_v25 = vor.u32 %v4893_v17, %v3352_v16 }
  0xa4   :  { %1588 = vmatpush.bf16.msrb.mxu0 %v3453_v19  ;;  %1557 = vmatmul.bf16.vlgmr.msra.gmra.mxu1 %v5617_v24  ;;  %v4933_v19 = vld [vmem:[%s7869_s1 + $0x1b0] sm:$0xf0] }
  0xa5   :  { %1601 = vmatpush.bf16.msrb.mxu1 %v3613_v20  ;;  %1570 = vmatmul.bf16.vlgmr.msra.gmra.mxu2 %v5643_v36  ;;  %v266_v20 = vld [vmem:[%s7869_s1 + $0x628] sm:$0x1]  ;;  %v3513_v31 = vor.u32 %v4933_v19, %v3512_v18  ;;  %v5146_v18 = vld [vmem:[%s7871_s3 + $0x240] sm:$0xf0]  ;;  %v4541_v19 = vld [vmem:[%s7871_s3 + $0x398] sm:$0xf] }
  0xa6   :  { %1614 = vmatpush.bf16.msrb.mxu2 %v3773_v32  ;;  %4077 = vmatmul.msk.bf16.vlgmr.msra.gmra.mxu3 %vm1306_vm1, %v5760_v35  ;;  %v3332_v32 = vld [vmem:[%s7869_s1 + $0x38] sm:$0xf] }
  0xa7   :  { %1627 = vmatpush.bf16.msrb.mxu3 %v3933_v34  ;;  %v910_v34 = vunpack.c.l.b16 %v266_v20  ;;  %v3333_v43 = vor.u32 %v4888_v27, %v3332_v32  ;;  %v5191_v20 = vld [vmem:[%s7871_s3 + $0x3a8] sm:$0xf0]  ;;  %v4341_v32 = vld [vmem:[%s7871_s3 + $0x208] sm:$0xf] }
  0xa8   :  { %1589 = vmatpush.bf16.msrb.mxu0 %v3433_v37  ;;  %v1339_v37 = vpop.f32.mrf.mxu0  ;;  %v4542_v27 = vor.u32 %v5191_v20, %v4541_v19  ;;  %v5048_v19 = vld [vmem:[%s7869_s1 + $0x548] sm:$0xf0] }
  0xa9   :  { %1602 = vmatpush.bf16.msrb.mxu1 %v3593_v41  ;;  %v3652_v41 = vld [vmem:[%s7869_s1 + $0x2b8] sm:$0xf]  ;;  %v1110_v51 = vpack.c.b16 %v910_v34, %v910_v34  ;;  %v1352_v16 = vpop.f32.mrf.mxu1  ;;  %v4521_v37 = vld [vmem:[%s7871_s3 + $0x370] sm:$0xf] }
  0xaa   :  { %1615 = vmatpush.bf16.msrb.mxu2 %v3753_v46  ;;  %v5008_v46 = vld [vmem:[%s7869_s1 + $0x408] sm:$0xf0]  ;;  %v3653_v55 = vor.u32 %v4968_v44, %v3652_v41  ;;  %v4032_v41 = vld [vmem:[%s7869_s1 + $0x5b0] sm:$0xf]  ;;  %v4321_v44 = vld [vmem:[%s7871_s3 + $0x1e0] sm:$0xf] }
  0xab   :  { %1628 = vmatpush.bf16.msrb.mxu3 %v3913_v48  ;;  %v3493_v48 = vor.u32 %v4928_v39, %v3492_v38  ;;  %v3813_v58 = vor.u32 %v5008_v46, %v3812_v45  ;;  %v1326_v0 = vand.u32 %v5500_v30, %v1110_v51  ;;  %v5073_v30 = vld [vmem:[%s7869_s1 + $0x610] sm:$0xf0]  ;;  %v5186_v38 = vld [vmem:[%s7871_s3 + $0x380] sm:$0xf0] }
  0xac   :  { %1590 = vmatpush.bf16.msrb.mxu0 %v3413_v49  ;;  %v3312_v49 = vld [vmem:[%s7869_s1 + $0x10] sm:$0xf]  ;;  %v4073_v17 = vor.u32 %v5073_v30, %v4072_v6  ;;  %v4522_v45 = vor.u32 %v5186_v38, %v4521_v37  ;;  %v5086_v30 = vld [vmem:[%s7871_s3 + $0x60] sm:$0xf0] }
  0xad   :  { %1603 = vmatpush.bf16.msrb.mxu1 %v3573_v53  ;;  %v4923_v53 = vld [vmem:[%s7869_s1 + $0x160] sm:$0xf0]  ;;  %v3313_v60 = vor.u32 %v4883_v50, %v3312_v49  ;;  %v4501_v49 = vld [vmem:[%s7871_s3 + $0x348] sm:$0xf]  ;;  %v4121_v6 = vld [vmem:[%s7871_s3 + $0x50] sm:$0xf] }
  0xae   :  { %1616 = vmatpush.bf16.msrb.mxu2 %v3733_v59  ;;  %v6506_v59 = vpop.f32.mrf.mxu2  ;;  %v3473_v63 = vor.u32 %v4923_v53, %v3472_v52  ;;  %v4012_v52 = vld [vmem:[%s7869_s1 + $0x588] sm:$0xf]  ;;  %v5058_v53 = vld [vmem:[%s7869_s1 + $0x598] sm:$0xf0]  ;;  %v3952_v38 = vld [vmem:[%s7869_s1 + $0x510] sm:$0xf] }
  0xaf   :  { %1629 = vmatpush.bf16.msrb.mxu3 %v3893_v61  ;;  %v3632_v61 = vld [vmem:[%s7869_s1 + $0x290] sm:$0xf] }
  0xb0   :  { %1591 = vmatpush.bf16.msrb.mxu0 %v3393_v62  ;;  %v4963_v62 = vld [vmem:[%s7869_s1 + $0x2a0] sm:$0xf0] }
  0xb1   :  { %1604 = vmatpush.bf16.msrb.mxu1 %v3553_v1  ;;  %v5151_v1 = vld [vmem:[%s7871_s3 + $0x268] sm:$0xf0]  ;;  %v3633_v8 = vor.u32 %v4963_v62, %v3632_v61  ;;  %v4013_v62 = vor.u32 %v5058_v53, %v4012_v52 }
  0xb2   :  { %1617 = vmatpush.bf16.msrb.mxu2 %v3713_v7  ;;  %v6536_v7 = vld [vmem:[%s7872_s2] sm:$0x1f]  ;;  %v4382_v12 = vor.u32 %v5151_v1, %v4381_v10  ;;  %v5131_v10 = vld [vmem:[%s7871_s3 + $0x1c8] sm:$0xf0] }
  0xb3   :  { %1630 = vmatpush.bf16.msrb.mxu3 %v3873_v9  ;;  %v4201_v9 = vld [vmem:[%s7871_s3 + $0xf0] sm:$0xf] }
  0xb4   :  { %1592 = vmatpush.bf16.msrb.mxu0 %v3373_v11  ;;  %v5106_v11 = vld [vmem:[%s7871_s3 + $0x100] sm:$0xf0] }
  0xb5   :  { %1605 = vmatpush.bf16.msrb.mxu1 %v3533_v15  ;;  %v6547_v15 = vpop.f32.mrf.mxu3  ;;  %v4202_v22 = vor.u32 %v5106_v11, %v4201_v9 }
  0xb6   :  { %1618 = vmatpush.bf16.msrb.mxu2 %v3693_v21  ;;  %v269_v21 = vperm.slane %v6536_v7, 0  ;;  %v1365_v29 = vpop.f32.mrf.mxu2 }
  0xb7   :  { %1631 = vmatpush.bf16.msrb.mxu3 %v3853_v23  ;;  %v4052_v23 = vld [vmem:[%s7869_s1 + $0x5d8] sm:$0xf] }
  0xb8   :  { %1593 = vmatpush.bf16.msrb.mxu0 %v3353_v25  ;;  %v5068_v25 = vld [vmem:[%s7869_s1 + $0x5e8] sm:$0xf0]  ;;  %v1338_v39 = vadd.f32 %v6415_v4, %v269_v21  ;;  %v5096_v4 = vld [vmem:[%s7871_s3 + $0xb0] sm:$0xf0] }
  0xb9   :  { %1606 = vmatpush.bf16.msrb.mxu1 %v3513_v31  ;;  %v4362_v31 = vor.u32 %v5146_v18, %v4361_v13  ;;  %v4053_v34 = vor.u32 %v5068_v25, %v4052_v23  ;;  %v4461_v13 = vld [vmem:[%s7871_s3 + $0x2f8] sm:$0xf] }
  0xba   :  { %1619 = vmatpush.bf16.msrb.mxu2 %v3673_v40  ;;  %v4182_v40 = vor.u32 %v5101_v28, %v4181_v26  ;;  %v1351_v50 = vadd.f32 %v6486_v47, %v1338_v39  ;;  %v3972_v18 = vld [vmem:[%s7869_s1 + $0x538] sm:$0xf]  ;;  %v4261_v26 = vld [vmem:[%s7871_s3 + $0x168] sm:$0xf]  ;;  %v5043_v39 = vld [vmem:[%s7869_s1 + $0x520] sm:$0xf0] }
  0xbb   :  { %1632 = vmatpush.bf16.msrb.mxu3 %v3833_v42  ;;  %v4161_v42 = vld [vmem:[%s7871_s3 + $0xa0] sm:$0xf] }
  0xbc   :  { %1594 = vmatpush.bf16.msrb.mxu0 %v3333_v43  ;;  %v4162_v51 = vor.u32 %v5096_v4, %v4161_v42  ;;  %v1364_v1 = vadd.f32 %v6506_v59, %v1351_v50  ;;  %v4281_v59 = vld [vmem:[%s7871_s3 + $0x190] sm:$0xf]  ;;  %v5231_v42 = vld [vmem:[%s7871_s3 + $0x4e8] sm:$0xf0]  ;;  %v270_v4 = vperm.slane %v6536_v7, 1 }
  0xbd   :  { %1607 = vmatpush.bf16.msrb.mxu1 %v3493_v48  ;;  %v1378_v46 = vpop.f32.mrf.mxu3  ;;  %v5136_v48 = vld [vmem:[%s7871_s3 + $0x1f0] sm:$0xf0]  ;;  %v4223_v50 = vld [vmem:[%s7871_s3 + $0x12c] sm:$0xf0] }
  0xbe   :  { %1620 = vmatpush.bf16.msrb.mxu2 %v3653_v55  ;;  %v4322_v47 = vor.u32 %v5136_v48, %v4321_v44  ;;  %v1377_v16 = vadd.f32 %v6547_v15, %v1364_v1  ;;  %v5081_v15 = vld [vmem:[%s7871_s3 + $0x38] sm:$0xf0]  ;;  %v4241_v46 = vld [vmem:[%s7871_s3 + $0x140] sm:$0xf] }
  0xbf   :  { %1633 = vmatpush.bf16.msrb.mxu3 %v3813_v58  ;;  %v5109_v48 = vld [vmem:[%s7871_s3 + $0x11c] sm:$0xf]  ;;  %v4401_v1 = vld [vmem:[%s7871_s3 + $0x280] sm:$0xf] }
  0xc0   :  { %1595 = vmatpush.bf16.msrb.mxu0 %v3313_v60  ;;  %v1389_v55 = vpop.f32.mrf.mxu0  ;;  %v4301_v60 = vld [vmem:[%s7871_s3 + $0x1b8] sm:$0xf] }
  0xc1   :  { %1608 = vmatpush.bf16.msrb.mxu1 %v3473_v63  ;;  %v6625_v58 = vpop.f32.mrf.mxu1  ;;  %v4481_v63 = vld [vmem:[%s7871_s3 + $0x320] sm:$0xf] }
  0xc2   :  { %1621 = vmatpush.bf16.msrb.mxu2 %v3633_v8  ;;  %v4302_v8 = vor.u32 %v5131_v10, %v4301_v60  ;;  %v5104_v10 = vld [vmem:[%s7871_s3 + $0xf4] sm:$0xf] }
  0xc3   :  { %1596 = vmatmul.bf16.vlgmr.msrb.gmra.mxu0 %v5548_v54  ;;  %1634 = vmatpush.bf16.msrb.mxu3 %v3793_v14  ;;  %v5141_v54 = vld [vmem:[%s7871_s3 + $0x218] sm:$0xf0]  ;;  %v5171_v14 = vld [vmem:[%s7871_s3 + $0x308] sm:$0xf0] }
  0xc4   :  { %1640 = vmatpush.bf16.msra.mxu0 %v1326_v0  ;;  %1609 = vmatmul.bf16.vlgmr.msrb.gmra.mxu1 %v5635_v33  ;;  %v5063_v33 = vld [vmem:[%s7869_s1 + $0x5c0] sm:$0xf0]  ;;  %v4342_v43 = vor.u32 %v5141_v54, %v4341_v32  ;;  %v5176_v0 = vld [vmem:[%s7871_s3 + $0x330] sm:$0xf0]  ;;  %v4462_v29 = vor.u32 %v5171_v14, %v4461_v13  ;;  %v5121_v32 = vld [vmem:[%s7871_s3 + $0x178] sm:$0xf0]  ;;  %v1390_v54 = vadd.f32 %v1389_v55, %v1377_v16 }
  0xc5   :  { %2955 = vmatpush.bf16.msra.mxu1 %v4222_v5  ;;  %1622 = vmatmul.bf16.vlgmr.msrb.gmra.mxu2 %v5617_v24  ;;  %v4033_v24 = vor.u32 %v5063_v33, %v4032_v41  ;;  %v5053_v5 = vld [vmem:[%s7869_s1 + $0x570] sm:$0xf0]  ;;  %v4482_v9 = vor.u32 %v5176_v0, %v4481_v63  ;;  %v4701_v33 = vld [vmem:[%s7871_s3 + $0x4d8] sm:$0xf]  ;;  %v5161_v55 = vld [vmem:[%s7871_s3 + $0x2b8] sm:$0xf0] }
  0xc6   :  { %2968 = vmatpush.bf16.msra.mxu2 %v4382_v12  ;;  %1635 = vmatmul.bf16.vlgmr.msrb.gmra.mxu3 %v5643_v36  ;;  %v5181_v36 = vld [vmem:[%s7871_s3 + $0x358] sm:$0xf0]  ;;  %v3993_v11 = vor.u32 %v5053_v5, %v3992_v3  ;;  %v5126_v12 = vld [vmem:[%s7871_s3 + $0x1a0] sm:$0xf0]  ;;  %v5076_v41 = vld [vmem:[%s7871_s3 + $0x10] sm:$0xf0]  ;;  %v4702_v53 = vor.u32 %v5231_v42, %v4701_v33 }
  0xc7   :  { %2981 = vmatpush.bf16.msra.mxu3 %v4542_v27  ;;  %v4502_v61 = vor.u32 %v5181_v36, %v4501_v49  ;;  %v4282_v25 = vor.u32 %v5126_v12, %v4281_v59  ;;  %v4441_v27 = vld [vmem:[%s7871_s3 + $0x2d0] sm:$0xf]  ;;  %v1653_v49 = vmax.f32 %v1390_v54, 0.0  ;;  %v4203_v63 = vld [vmem:[%s7871_s3 + $0x104] sm:$0xf0] }
  0xc8   :  { %1641 = vmatpush.bf16.msra.mxu0 %v4073_v17  ;;  %v4122_v17 = vor.u32 %v5086_v30, %v4121_v6  ;;  %v1391_v20 = vpop.f32.mrf.mxu0  ;;  %v6671_v21 = vpop.f32.mrf.mxu2  ;;  %v4661_v5 = vld [vmem:[%s7871_s3 + $0x488] sm:$0xf]  ;;  %v5221_v6 = vld [vmem:[%s7871_s3 + $0x498] sm:$0xf0]  ;;  %v4641_v16 = vld [vmem:[%s7871_s3 + $0x460] sm:$0xf] }
  0xc9   :  { %2956 = vmatpush.bf16.msra.mxu1 %v4202_v22  ;;  %v4101_v22 = vld [vmem:[%s7871_s3 + $0x28] sm:$0xf]  ;;  %v1404_v23 = vpop.f32.mrf.mxu1  ;;  %v6682_v28 = vpop.f32.mrf.mxu3  ;;  %v6746_v3 = vpack.c.bf16 %v1653_v49, %v1653_v49  ;;  %v5149_v30 = vld [vmem:[%s7871_s3 + $0x25c] sm:$0xf]  ;;  %v4662_v13 = vor.u32 %v5221_v6, %v4661_v5  ;;  %v4601_v33 = vld [vmem:[%s7871_s3 + $0x410] sm:$0xf] }
  0xca   :  { %2969 = vmatpush.bf16.msra.mxu2 %v4362_v31  ;;  %v3973_v31 = vor.u32 %v5048_v19, %v3972_v18  ;;  %v4102_v37 = vor.u32 %v5081_v15, %v4101_v22  ;;  %v5144_v18 = vld [vmem:[%s7871_s3 + $0x234] sm:$0xf]  ;;  %v4363_v19 = vld [vmem:[%s7871_s3 + $0x244] sm:$0xf0]  ;;  %v5094_v22 = vld [vmem:[%s7871_s3 + $0xa4] sm:$0xf] }
  0xcb   :  { %2982 = vmatpush.bf16.msra.mxu3 %v4522_v45  ;;  %v3953_v45 = vor.u32 %v5043_v39, %v3952_v38  ;;  %v4163_v15 = vld [vmem:[%s7871_s3 + $0xb4] sm:$0xf0]  ;;  %v5206_v42 = vld [vmem:[%s7871_s3 + $0x420] sm:$0xf0]  ;;  %v4123_v49 = vld [vmem:[%s7871_s3 + $0x64] sm:$0xf0] }
  0xcc   :  { %1642 = vmatpush.bf16.msra.mxu0 %v4053_v34  ;;  %v5166_v34 = vld [vmem:[%s7871_s3 + $0x2e0] sm:$0xf0]  ;;  %v4166_v54 = vor.u32 %v5094_v22, %v4163_v15  ;;  %v5189_v5 = vld [vmem:[%s7871_s3 + $0x39c] sm:$0xf]  ;;  %v4543_v6 = vld [vmem:[%s7871_s3 + $0x3ac] sm:$0xf0] }
  0xcd   :  { %2957 = vmatpush.bf16.msra.mxu1 %v4182_v40  ;;  %v4081_v40 = vld [vmem:[%s7871_s3] sm:$0xf]  ;;  %v4442_v44 = vor.u32 %v5166_v34, %v4441_v27  ;;  %v5114_v22 = vld [vmem:[%s7871_s3 + $0x144] sm:$0xf] }
  0xce   :  { %2970 = vmatpush.bf16.msra.mxu2 %v4342_v43  ;;  %v4262_v43 = vor.u32 %v5121_v32, %v4261_v26  ;;  %v4082_v36 = vor.u32 %v5076_v41, %v4081_v40  ;;  %v4621_v26 = vld [vmem:[%s7871_s3 + $0x438] sm:$0xf]  ;;  %v4343_v32 = vld [vmem:[%s7871_s3 + $0x21c] sm:$0xf0]  ;;  %v4143_v40 = vld [vmem:[%s7871_s3 + $0x8c] sm:$0xf0] }
  0xcf   :  { %2983 = vmatpush.bf16.msra.mxu3 %v4502_v61  ;;  %v1403_v61 = vadd.f32 %v6625_v58, %v270_v4  ;;  %v5156_v58 = vld [vmem:[%s7871_s3 + $0x290] sm:$0xf0]  ;;  %v5134_v4 = vld [vmem:[%s7871_s3 + $0x1e4] sm:$0xf] }
  0xd0   :  { %1643 = vmatpush.bf16.msra.mxu0 %v4033_v24  ;;  %v5116_v24 = vld [vmem:[%s7871_s3 + $0x150] sm:$0xf0]  ;;  %v1417_v52 = vpop.f32.mrf.mxu2  ;;  %v4402_v12 = vor.u32 %v5156_v58, %v4401_v1  ;;  %v4561_v1 = vld [vmem:[%s7871_s3 + $0x3c0] sm:$0xf]  ;;  %v4283_v58 = vld [vmem:[%s7871_s3 + $0x1a4] sm:$0xf0] }
  0xd1   :  { %2958 = vmatpush.bf16.msra.mxu1 %v4162_v51  ;;  %v4421_v51 = vld [vmem:[%s7871_s3 + $0x2a8] sm:$0xf]  ;;  %v1430_v60 = vpop.f32.mrf.mxu3  ;;  %v1416_v59 = vadd.f32 %v6671_v21, %v1403_v61  ;;  %v5201_v52 = vld [vmem:[%s7871_s3 + $0x3f8] sm:$0xf0]  ;;  %v5079_v61 = vld [vmem:[%s7871_s3 + $0x2c] sm:$0xf] }
  0xd2   :  { %2971 = vmatpush.bf16.msra.mxu2 %v4322_v47  ;;  %v4242_v47 = vor.u32 %v5116_v24, %v4241_v46  ;;  %v4422_v0 = vor.u32 %v5161_v55, %v4421_v51  ;;  %v5084_v46 = vld [vmem:[%s7871_s3 + $0x54] sm:$0xf]  ;;  %v4602_v24 = vor.u32 %v5206_v42, %v4601_v33  ;;  %v4581_v51 = vld [vmem:[%s7871_s3 + $0x3e8] sm:$0xf]  ;;  %v5129_v55 = vld [vmem:[%s7871_s3 + $0x1bc] sm:$0xf] }
  0xd3   :  { %2984 = vmatpush.bf16.msra.mxu3 %v4482_v9  ;;  %v4206_v9 = vor.u32 %v5104_v10, %v4203_v63  ;;  %v1429_v20 = vadd.f32 %v6682_v28, %v1416_v59  ;;  %v5211_v28 = vld [vmem:[%s7871_s3 + $0x448] sm:$0xf0]  ;;  %v4126_v60 = vor.u32 %v5084_v46, %v4123_v49  ;;  %v4582_v10 = vor.u32 %v5201_v52, %v4581_v51  ;;  %v5074_v59 = vld [vmem:[%s7871_s3 + $0x4] sm:$0xf]  ;;  %v5164_v42 = vld [vmem:[%s7871_s3 + $0x2d4] sm:$0xf] }
  0xd4   :  { %1644 = vmatpush.bf16.msra.mxu0 %v4013_v62  ;;  %v4226_v62 = vor.u32 %v5109_v48, %v4223_v50  ;;  %v4622_v38 = vor.u32 %v5211_v28, %v4621_v26  ;;  %v4503_v26 = vld [vmem:[%s7871_s3 + $0x35c] sm:$0xf0]  ;;  %v4863_v49 = vld [vmem:[%s7871_s3 + $0x62c] sm:$0xf0]  ;;  %v5159_v51 = vld [vmem:[%s7871_s3 + $0x2ac] sm:$0xf] }
  0xd5   :  { %2959 = vmatpush.bf16.msra.mxu1 %v4142_v2  ;;  %v4682_v2 = vor.u32 %v5226_v57, %v4681_v56  ;;  %v4303_v56 = vld [vmem:[%s7871_s3 + $0x1cc] sm:$0xf0]  ;;  %v4423_v52 = vld [vmem:[%s7871_s3 + $0x2bc] sm:$0xf0] }
  0xd6   :  { %2972 = vmatpush.bf16.msra.mxu2 %v4302_v8  ;;  %v4383_v8 = vld [vmem:[%s7871_s3 + $0x26c] sm:$0xf0]  ;;  %v4306_v63 = vor.u32 %v5129_v55, %v4303_v56  ;;  %v5266_v56 = vld [vmem:[%s7871_s3 + $0x600] sm:$0xf0] }
  0xd7   :  { %2985 = vmatpush.bf16.msra.mxu3 %v4462_v29  ;;  %v4386_v14 = vor.u32 %v5149_v30, %v4383_v8  ;;  %v4841_v55 = vld [vmem:[%s7871_s3 + $0x5f0] sm:$0xf] }
  0xd8   :  { %1645 = vmatpush.bf16.msra.mxu0 %v3993_v11  ;;  %v5099_v11 = vld [vmem:[%s7871_s3 + $0xcc] sm:$0xf] }
  0xd9   :  { %2960 = vmatpush.bf16.msra.mxu1 %v4122_v17  ;;  %v5216_v17 = vld [vmem:[%s7871_s3 + $0x470] sm:$0xf0] }
  0xda   :  { %2973 = vmatpush.bf16.msra.mxu2 %v4282_v25  ;;  %v4642_v23 = vor.u32 %v5216_v17, %v4641_v16  ;;  %v4366_v25 = vor.u32 %v5144_v18, %v4363_v19  ;;  %v5184_v16 = vld [vmem:[%s7871_s3 + $0x374] sm:$0xf]  ;;  %v4523_v17 = vld [vmem:[%s7871_s3 + $0x384] sm:$0xf0]  ;;  %v271_v19 = vperm.slane %v6536_v7, 2 }
  0xdb   :  { %2986 = vmatpush.bf16.msra.mxu3 %v4442_v44  ;;  %v4526_v15 = vor.u32 %v5184_v16, %v4523_v17  ;;  %v4823_v16 = vld [vmem:[%s7871_s3 + $0x5dc] sm:$0xf0] }
  0xdc   :  { %1646 = vmatpush.bf16.msra.mxu0 %v3973_v31  ;;  %v5139_v31 = vld [vmem:[%s7871_s3 + $0x20c] sm:$0xf] }
  0xdd   :  { %2961 = vmatpush.bf16.msra.mxu1 %v4102_v37  ;;  %v5089_v37 = vld [vmem:[%s7871_s3 + $0x7c] sm:$0xf]  ;;  %v4346_v41 = vor.u32 %v5139_v31, %v4343_v32  ;;  %v5174_v32 = vld [vmem:[%s7871_s3 + $0x324] sm:$0xf] }
  0xde   :  { %2974 = vmatpush.bf16.msra.mxu2 %v4262_v43  ;;  %v4323_v43 = vld [vmem:[%s7871_s3 + $0x1f4] sm:$0xf0] }
  0xdf   :  { %2987 = vmatpush.bf16.msra.mxu3 %v4422_v0  ;;  %v4326_v50 = vor.u32 %v5134_v4, %v4323_v43  ;;  %v5124_v0 = vld [vmem:[%s7871_s3 + $0x194] sm:$0xf]  ;;  %v4443_v4 = vld [vmem:[%s7871_s3 + $0x2e4] sm:$0xf0]  ;;  %v4861_v43 = vld [vmem:[%s7871_s3 + $0x618] sm:$0xf] }
  0xe0   :  { %1647 = vmatpush.bf16.msra.mxu0 %v3953_v45  ;;  %v1441_v29 = vpop.f32.mrf.mxu0  ;;  %v4146_v45 = vor.u32 %v5089_v37, %v4143_v40  ;;  %v5169_v37 = vld [vmem:[%s7871_s3 + $0x2fc] sm:$0xf] }
  0xe1   :  { %2962 = vmatpush.bf16.msra.mxu1 %v4082_v36  ;;  %v1442_v27 = vadd.f32 %v1441_v29, %v1429_v20  ;;  %v1454_v34 = vpop.f32.mrf.mxu1 }
  0xe2   :  { %2975 = vmatpush.bf16.msra.mxu2 %v4242_v47 }
  0xe3   :  { %4078 = vmatmul.msk.bf16.vlgmr.msra.gmra.mxu0 %vm1306_vm1, %v5760_v35  ;;  %v4183_v35 = vld [vmem:[%s7871_s3 + $0xdc] sm:$0xf0]  ;;  %2988 = vmatpush.bf16.msra.mxu3 %v4402_v12  ;;  %v1455_v39 = vadd.f32 %v1454_v34, %v1442_v27  ;;  %v5119_v12 = vld [vmem:[%s7871_s3 + $0x16c] sm:$0xf]  ;;  %v4483_v27 = vld [vmem:[%s7871_s3 + $0x334] sm:$0xf0] }
  0xe4   :  { %2994 = vmatpush.bf16.msrb.mxu0 %v4702_v53  ;;  %2963 = vmatmul.bf16.vlgmr.msra.gmra.mxu1 %v6746_v3  ;;  %v4186_v21 = vor.u32 %v5099_v11, %v4183_v35  ;;  %v4286_v35 = vor.u32 %v5124_v0, %v4283_v58 }
  0xe5   :  { %v1654_v44 = vmax.f32 %v1455_v39, 0.0 }
  0xe6   :  { %3020 = vmatpush.bf16.msrb.mxu2 %v4226_v62  ;;  %v4103_v62 = vld [vmem:[%s7871_s3 + $0x3c] sm:$0xf0] }
  0xe7   :  { %3033 = vmatpush.bf16.msrb.mxu3 %v4386_v14  ;;  %v6825_v48 = vpack.c.bf16 %v1654_v44, %v1654_v44  ;;  %v4106_v30 = vor.u32 %v5079_v61, %v4103_v62  ;;  %v4263_v14 = vld [vmem:[%s7871_s3 + $0x17c] sm:$0xf0]  ;;  %v5271_v44 = vld [vmem:[%s7871_s3 + $0x628] sm:$0xf0]  ;;  %v5112_v61 = vld [vmem:[%s7871_s3 + $0x130] sm:$0xf0] }
  0xe8   :  { %2995 = vmatpush.bf16.msrb.mxu0 %v4682_v2  ;;  %v1467_v36 = vpop.f32.mrf.mxu2  ;;  %v1443_v53 = vpop.f32.mrf.mxu0  ;;  %v5196_v2 = vld [vmem:[%s7871_s3 + $0x3d0] sm:$0xf0] }
  0xe9   :  { %2976 = vmatmul.bf16.vlgmr.msra.gmra.mxu2 %v6825_v48  ;;  %v1456_v57 = vpop.f32.mrf.mxu1  ;;  %v1480_v47 = vpop.f32.mrf.mxu3  ;;  %v4562_v8 = vor.u32 %v5196_v2, %v4561_v1  ;;  %v1468_v28 = vadd.f32 %v1467_v36, %v271_v19 }
  0xea   :  { %3021 = vmatpush.bf16.msrb.mxu2 %v4206_v9  ;;  %v4083_v9 = vld [vmem:[%s7871_s3 + $0x14] sm:$0xf0]  ;;  %v5264_v57 = vld [vmem:[%s7871_s3 + $0x5f4] sm:$0xf] }
  0xeb   :  { %3034 = vmatpush.bf16.msrb.mxu3 %v4366_v25  ;;  %v4086_v20 = vor.u32 %v5074_v59, %v4083_v9  ;;  %v5179_v25 = vld [vmem:[%s7871_s3 + $0x34c] sm:$0xf]  ;;  %v1481_v34 = vadd.f32 %v1480_v47, %v1468_v28  ;;  %v4821_v59 = vld [vmem:[%s7871_s3 + $0x5c8] sm:$0xf]  ;;  %v5261_v9 = vld [vmem:[%s7871_s3 + $0x5d8] sm:$0xf0] }
  0xec   :  { %2996 = vmatpush.bf16.msrb.mxu0 %v4662_v13  ;;  %v4546_v13 = vor.u32 %v5189_v5, %v4543_v6  ;;  %v4506_v31 = vor.u32 %v5179_v25, %v4503_v26  ;;  %v4426_v5 = vor.u32 %v5159_v51, %v4423_v52  ;;  %v5154_v6 = vld [vmem:[%s7871_s3 + $0x284] sm:$0xf]  ;;  %v4803_v28 = vld [vmem:[%s7871_s3 + $0x5b4] sm:$0xf0]  ;;  %v4741_v51 = vld [vmem:[%s7871_s3 + $0x528] sm:$0xf] }
  0xed   :  { %v5102_v25 = vld [vmem:[%s7871_s3 + $0xe0] sm:$0xf0]  ;;  %v5241_v52 = vld [vmem:[%s7871_s3 + $0x538] sm:$0xf0] }
  0xee   :  { %3022 = vmatpush.bf16.msrb.mxu2 %v4186_v21  ;;  %v4266_v21 = vor.u32 %v5119_v12, %v4263_v14  ;;  %v4209_v12 = vld [vmem:[%s7871_s3 + $0xf8] sm:$0xf]  ;;  %v4822_v14 = vor.u32 %v5261_v9, %v4821_v59  ;;  %v5229_v9 = vld [vmem:[%s7871_s3 + $0x4dc] sm:$0xf] }
  0xef   :  { %3035 = vmatpush.bf16.msrb.mxu3 %v4346_v41 }
  0xf0   :  { %2997 = vmatpush.bf16.msrb.mxu0 %v4642_v23  ;;  %v1469_v11 = vpop.f32.mrf.mxu2  ;;  %v4243_v23 = vld [vmem:[%s7871_s3 + $0x154] sm:$0xf0] }
  0xf1   :  { %v1482_v18 = vpop.f32.mrf.mxu3  ;;  %v4246_v29 = vor.u32 %v5114_v22, %v4243_v23  ;;  %v5259_v11 = vld [vmem:[%s7871_s3 + $0x5cc] sm:$0xf]  ;;  %v5256_v22 = vld [vmem:[%s7871_s3 + $0x5b0] sm:$0xf0]  ;;  %v4189_v23 = vld [vmem:[%s7871_s3 + $0xd0] sm:$0xf] }
  0xf2   :  { %3023 = vmatpush.bf16.msrb.mxu2 %v4166_v54  ;;  %v4486_v54 = vor.u32 %v5174_v32, %v4483_v27  ;;  %v4826_v17 = vor.u32 %v5259_v11, %v4823_v16  ;;  %v4190_v32 = vor.u32 %v5102_v25, %v4189_v23  ;;  %v4781_v27 = vld [vmem:[%s7871_s3 + $0x578] sm:$0xf]  ;;  %v4703_v11 = vld [vmem:[%s7871_s3 + $0x4ec] sm:$0xf0]  ;;  %v4869_v25 = vld [vmem:[%s7871_s3 + $0x620] sm:$0xf] }
  0xf3   :  { %3036 = vmatpush.bf16.msrb.mxu3 %v4326_v50  ;;  %v4446_v50 = vor.u32 %v5164_v42, %v4443_v4  ;;  %v4761_v4 = vld [vmem:[%s7871_s3 + $0x550] sm:$0xf] }
  0xf4   :  { %2998 = vmatpush.bf16.msrb.mxu0 %v4622_v38  ;;  %v4463_v38 = vld [vmem:[%s7871_s3 + $0x30c] sm:$0xf0] }
  0xf5   :  { %v4466_v33 = vor.u32 %v5169_v37, %v4463_v38  ;;  %v4169_v37 = vld [vmem:[%s7871_s3 + $0xa8] sm:$0xf]  ;;  %v5097_v38 = vld [vmem:[%s7871_s3 + $0xb8] sm:$0xf0] }
  0xf6   :  { %3024 = vmatpush.bf16.msrb.mxu2 %v4146_v45  ;;  %v5269_v45 = vld [vmem:[%s7871_s3 + $0x61c] sm:$0xf]  ;;  %v4170_v42 = vor.u32 %v5097_v38, %v4169_v37  ;;  %v4389_v38 = vld [vmem:[%s7871_s3 + $0x260] sm:$0xf] }
  0xf7   :  { %3037 = vmatpush.bf16.msrb.mxu3 %v4306_v63  ;;  %v4866_v36 = vor.u32 %v5269_v45, %v4863_v49  ;;  %v4843_v63 = vld [vmem:[%s7871_s3 + $0x604] sm:$0xf0]  ;;  %v4149_v45 = vld [vmem:[%s7871_s3 + $0x80] sm:$0xf] }
  0xf8   :  { %2999 = vmatpush.bf16.msrb.mxu0 %v4602_v24  ;;  %v4862_v24 = vor.u32 %v5271_v44, %v4861_v43  ;;  %v4846_v0 = vor.u32 %v5264_v57, %v4843_v63  ;;  %v5246_v43 = vld [vmem:[%s7871_s3 + $0x560] sm:$0xf0]  ;;  %v5244_v44 = vld [vmem:[%s7871_s3 + $0x554] sm:$0xf]  ;;  %v4742_v57 = vor.u32 %v5241_v52, %v4741_v51 }
  0xfa   :  { %3025 = vmatpush.bf16.msrb.mxu2 %v4126_v60  ;;  %3007 = vmatpush.bf16.msrb.mxu1 %v4862_v24  ;;  %v4229_v60 = vld [vmem:[%s7871_s3 + $0x120] sm:$0xf]  ;;  %v4763_v24 = vld [vmem:[%s7871_s3 + $0x564] sm:$0xf0] }
  0xfb   :  { %3038 = vmatpush.bf16.msrb.mxu3 %v4286_v35  ;;  %v4766_v49 = vor.u32 %v5244_v44, %v4763_v24  ;;  %v5267_v44 = vld [vmem:[%s7871_s3 + $0x608] sm:$0xf0] }
  0xfc   :  { %3000 = vmatpush.bf16.msrb.mxu0 %v4582_v10  ;;  %v4842_v10 = vor.u32 %v5266_v56, %v4841_v55  ;;  %v4129_v55 = vld [vmem:[%s7871_s3 + $0x58] sm:$0xf]  ;;  %v5087_v56 = vld [vmem:[%s7871_s3 + $0x68] sm:$0xf0] }
  0xfd   :  { %v4130_v63 = vor.u32 %v5087_v56, %v4129_v55  ;;  %v4643_v55 = vld [vmem:[%s7871_s3 + $0x474] sm:$0xf0]  ;;  %v4649_v56 = vld [vmem:[%s7871_s3 + $0x468] sm:$0xf] }
  0xfe   :  { %3026 = vmatpush.bf16.msrb.mxu2 %v4106_v30  ;;  %3008 = vmatpush.bf16.msrb.mxu1 %v4842_v10  ;;  %v4403_v30 = vld [vmem:[%s7871_s3 + $0x294] sm:$0xf0] }
  0xff   :  { %3039 = vmatpush.bf16.msrb.mxu3 %v4266_v21  ;;  %v4406_v18 = vor.u32 %v5154_v6, %v4403_v30  ;;  %v4801_v21 = vld [vmem:[%s7871_s3 + $0x5a0] sm:$0xf]  ;;  %v4723_v30 = vld [vmem:[%s7871_s3 + $0x514] sm:$0xf0] }
 0x100   :  { %3001 = vmatpush.bf16.msrb.mxu0 %v4562_v8  ;;  %v1493_v39 = vpop.f32.mrf.mxu0  ;;  %v4230_v8 = vor.u32 %v5112_v61, %v4229_v60  ;;  %v4802_v26 = vor.u32 %v5256_v22, %v4801_v21  ;;  %v5224_v21 = vld [vmem:[%s7871_s3 + $0x4b4] sm:$0xf]  ;;  %v4683_v22 = vld [vmem:[%s7871_s3 + $0x4c4] sm:$0xf0] }
 0x101   :  { %v1494_v40 = vadd.f32 %v1493_v39, %v1481_v34  ;;  %v1506_v41 = vpop.f32.mrf.mxu1  ;;  %v5251_v34 = vld [vmem:[%s7871_s3 + $0x588] sm:$0xf0] }
 0x102   :  { %3027 = vmatpush.bf16.msrb.mxu2 %v4086_v20  ;;  %3009 = vmatpush.bf16.msrb.mxu1 %v4822_v14  ;;  %v4782_v39 = vor.u32 %v5251_v34, %v4781_v27  ;;  %v5232_v14 = vld [vmem:[%s7871_s3 + $0x4f0] sm:$0xf0] }
 0x103   :  { %3040 = vmatpush.bf16.msrb.mxu3 %v4246_v29  ;;  %v1507_v46 = vadd.f32 %v1506_v41, %v1494_v40  ;;  %v4783_v40 = vld [vmem:[%s7871_s3 + $0x58c] sm:$0xf0] }
 0x104   :  { %3046 = vmatpush.bf16.msra.mxu0 %v4546_v13  ;;  %v5107_v13 = vld [vmem:[%s7871_s3 + $0x108] sm:$0xf0] }
 0x105   :  { %3028 = vmatmul.bf16.vlgmr.msrb.gmra.mxu2 %v6746_v3  ;;  %v4210_v19 = vor.u32 %v5107_v13, %v4209_v12  ;;  %v4706_v12 = vor.u32 %v5229_v9, %v4703_v11  ;;  %v4709_v13 = vld [vmem:[%s7871_s3 + $0x4e0] sm:$0xf]  ;;  %v5212_v9 = vld [vmem:[%s7871_s3 + $0x450] sm:$0xf0] }
 0x106   :  { %3072 = vmatpush.bf16.msra.mxu2 %v4866_v36  ;;  %3010 = vmatpush.bf16.msrb.mxu1 %v4802_v26  ;;  %v5272_v26 = vld [vmem:[%s7871_s3 + $0x630] sm:$0xf0] }
 0x108   :  { %3047 = vmatpush.bf16.msra.mxu0 %v4526_v15  ;;  %v1519_v53 = vpop.f32.mrf.mxu2  ;;  %v1495_v62 = vpop.f32.mrf.mxu0  ;;  %v5254_v15 = vld [vmem:[%s7871_s3 + $0x5a4] sm:$0xf] }
 0x109   :  { %v1520_v47 = vadd.f32 %v1519_v53, %v1507_v46  ;;  %v1532_v2 = vpop.f32.mrf.mxu3  ;;  %v1508_v58 = vpop.f32.mrf.mxu1  ;;  %v4806_v29 = vor.u32 %v5254_v15, %v4803_v28  ;;  %v4762_v46 = vor.u32 %v5246_v43, %v4761_v4  ;;  %v5239_v53 = vld [vmem:[%s7871_s3 + $0x52c] sm:$0xf]  ;;  %v4689_v15 = vld [vmem:[%s7871_s3 + $0x4b8] sm:$0xf]  ;;  %v4669_v4 = vld [vmem:[%s7871_s3 + $0x490] sm:$0xf] }
 0x10a   :  { %3073 = vmatpush.bf16.msra.mxu2 %v4846_v0  ;;  %3011 = vmatpush.bf16.msrb.mxu1 %v4782_v39  ;;  %v4721_v0 = vld [vmem:[%s7871_s3 + $0x500] sm:$0xf]  ;;  %v4109_v58 = vld [vmem:[%s7871_s3 + $0x30] sm:$0xf]  ;;  %v5152_v39 = vld [vmem:[%s7871_s3 + $0x270] sm:$0xf0] }
 0x10b   :  { %v1655_v1 = vmax.f32 %v1520_v47, 0.0  ;;  %v4743_v47 = vld [vmem:[%s7871_s3 + $0x53c] sm:$0xf0] }
 0x10c   :  { %3048 = vmatpush.bf16.msra.mxu0 %v4506_v31  ;;  %v4746_v61 = vor.u32 %v5239_v53, %v4743_v47  ;;  %v5214_v53 = vld [vmem:[%s7871_s3 + $0x464] sm:$0xf] }
 0x10d   :  { %v6968_v35 = vpack.c.bf16 %v1655_v1, %v1655_v1  ;;  %v5236_v1 = vld [vmem:[%s7871_s3 + $0x510] sm:$0xf0]  ;;  %v5262_v47 = vld [vmem:[%s7871_s3 + $0x5e0] sm:$0xf0] }
 0x10e   :  { %3074 = vmatpush.bf16.msra.mxu2 %v4826_v17  ;;  %3012 = vmatpush.bf16.msrb.mxu1 %v4762_v46  ;;  %v4722_v6 = vor.u32 %v5236_v1, %v4721_v0  ;;  %v4089_v17 = vld [vmem:[%s7871_s3 + $0x8] sm:$0xf]  ;;  %v4390_v46 = vor.u32 %v5152_v39, %v4389_v38  ;;  %v4349_v0 = vld [vmem:[%s7871_s3 + $0x210] sm:$0xf]  ;;  %v5142_v1 = vld [vmem:[%s7871_s3 + $0x220] sm:$0xf0] }
 0x10f   :  { %2989 = vmatmul.bf16.vlgmr.msra.gmra.mxu3 %v6968_v35  ;;  %v4350_v11 = vor.u32 %v5142_v1, %v4349_v0  ;;  %v5202_v38 = vld [vmem:[%s7871_s3 + $0x400] sm:$0xf0]  ;;  %v5117_v0 = vld [vmem:[%s7871_s3 + $0x158] sm:$0xf0] }
 0x110   :  { %3049 = vmatpush.bf16.msra.mxu0 %v4486_v54  ;;  %3085 = vmatpush.bf16.msra.mxu3 %v4230_v8  ;;  %v1521_v20 = vpop.f32.mrf.mxu2  ;;  %v5249_v54 = vld [vmem:[%s7871_s3 + $0x57c] sm:$0xf] }
 0x111   :  { %v1534_v31 = vpop.f32.mrf.mxu3  ;;  %v4786_v41 = vor.u32 %v5249_v54, %v4783_v40  ;;  %v4849_v40 = vld [vmem:[%s7871_s3 + $0x5f8] sm:$0xf] }
 0x112   :  { %3075 = vmatpush.bf16.msra.mxu2 %v4806_v29  ;;  %3013 = vmatpush.bf16.msrb.mxu1 %v4742_v57  ;;  %v4686_v29 = vor.u32 %v5224_v21, %v4683_v22  ;;  %v5227_v31 = vld [vmem:[%s7871_s3 + $0x4c8] sm:$0xf0]  ;;  %v4850_v51 = vor.u32 %v5267_v44, %v4849_v40  ;;  %v4829_v57 = vld [vmem:[%s7871_s3 + $0x5d0] sm:$0xf]  ;;  %v5252_v21 = vld [vmem:[%s7871_s3 + $0x590] sm:$0xf0] }
 0x113   :  { %v4690_v34 = vor.u32 %v5227_v31, %v4689_v15  ;;  %v5207_v15 = vld [vmem:[%s7871_s3 + $0x428] sm:$0xf0]  ;;  %v4769_v31 = vld [vmem:[%s7871_s3 + $0x558] sm:$0xf] }
 0x114   :  { %3050 = vmatpush.bf16.msra.mxu0 %v4466_v33  ;;  %3086 = vmatpush.bf16.msra.mxu3 %v4210_v19  ;;  %v272_v33 = vperm.slane %v6536_v7, 3  ;;  %v5092_v7 = vld [vmem:[%s7871_s3 + $0x90] sm:$0xf0]  ;;  %v4710_v19 = vor.u32 %v5232_v14, %v4709_v13  ;;  %v4329_v13 = vld [vmem:[%s7871_s3 + $0x1e8] sm:$0xf] }
 0x115   :  { %v5137_v14 = vld [vmem:[%s7871_s3 + $0x1f8] sm:$0xf0]  ;;  %v4563_v44 = vld [vmem:[%s7871_s3 + $0x3d4] sm:$0xf0] }
 0x116   :  { %3076 = vmatpush.bf16.msra.mxu2 %v4786_v41  ;;  %v1533_v36 = vadd.f32 %v1532_v2, %v272_v33  ;;  %v5234_v2 = vld [vmem:[%s7871_s3 + $0x504] sm:$0xf]  ;;  %3014 = vmatpush.bf16.msrb.mxu1 %v4722_v6  ;;  %v4870_v41 = vor.u32 %v5272_v26, %v4869_v25  ;;  %v5219_v33 = vld [vmem:[%s7871_s3 + $0x48c] sm:$0xf]  ;;  %v4629_v6 = vld [vmem:[%s7871_s3 + $0x440] sm:$0xf] }
 0x117   :  { %v4726_v59 = vor.u32 %v5234_v2, %v4723_v30  ;;  %v4830_v2 = vor.u32 %v5262_v47, %v4829_v57  ;;  %v4809_v30 = vld [vmem:[%s7871_s3 + $0x5a8] sm:$0xf]  ;;  %v4309_v26 = vld [vmem:[%s7871_s3 + $0x1c0] sm:$0xf]  ;;  %v5237_v47 = vld [vmem:[%s7871_s3 + $0x518] sm:$0xf0] }
 0x118   :  { %3051 = vmatpush.bf16.msra.mxu0 %v4446_v50  ;;  %3087 = vmatpush.bf16.msra.mxu3 %v4190_v32  ;;  %v4150_v50 = vor.u32 %v5092_v7, %v4149_v45  ;;  %v5222_v7 = vld [vmem:[%s7871_s3 + $0x4a0] sm:$0xf0]  ;;  %v4729_v57 = vld [vmem:[%s7871_s3 + $0x508] sm:$0xf] }
 0x119   :  { %v4670_v24 = vor.u32 %v5222_v7, %v4669_v4  ;;  %v4749_v7 = vld [vmem:[%s7871_s3 + $0x530] sm:$0xf]  ;;  %v4730_v1 = vor.u32 %v5237_v47, %v4729_v57  ;;  %v4551_v57 = vld [vmem:[%s7871_s3 + $0x3b4] sm:$0xf0] }
 0x11a   :  { %3077 = vmatpush.bf16.msra.mxu2 %v4766_v49  ;;  %3059 = vmatpush.bf16.msra.mxu1 %v4706_v12  ;;  %v4630_v12 = vor.u32 %v5212_v9, %v4629_v6  ;;  %v5225_v9 = vld [vmem:[%s7871_s3 + $0x4bc] sm:$0xf] }
 0x11c   :  { %3052 = vmatpush.bf16.msra.mxu0 %v4426_v5  ;;  %3088 = vmatpush.bf16.msra.mxu3 %v4170_v42  ;;  %v5082_v5 = vld [vmem:[%s7871_s3 + $0x40] sm:$0xf0]  ;;  %v4663_v42 = vld [vmem:[%s7871_s3 + $0x49c] sm:$0xf0] }
 0x11d   :  { %v4110_v16 = vor.u32 %v5082_v5, %v4109_v58  ;;  %v4666_v45 = vor.u32 %v5219_v33, %v4663_v42  ;;  %v5209_v58 = vld [vmem:[%s7871_s3 + $0x43c] sm:$0xf]  ;;  %v4623_v5 = vld [vmem:[%s7871_s3 + $0x44c] sm:$0xf0]  ;;  %v4289_v33 = vld [vmem:[%s7871_s3 + $0x198] sm:$0xf] }
 0x11e   :  { %3078 = vmatpush.bf16.msra.mxu2 %v4746_v61  ;;  %3060 = vmatpush.bf16.msra.mxu1 %v4686_v29  ;;  %v5217_v61 = vld [vmem:[%s7871_s3 + $0x478] sm:$0xf0]  ;;  %v5127_v42 = vld [vmem:[%s7871_s3 + $0x1a8] sm:$0xf0] }
 0x11f   :  { %3041 = vmatmul.bf16.vlgmr.msrb.gmra.mxu3 %v6825_v48 }
 0x120   :  { %3053 = vmatpush.bf16.msra.mxu0 %v4406_v18  ;;  %v1545_v60 = vpop.f32.mrf.mxu0  ;;  %3089 = vmatpush.bf16.msra.mxu3 %v4150_v50  ;;  %v5077_v18 = vld [vmem:[%s7871_s3 + $0x18] sm:$0xf0]  ;;  %v5147_v50 = vld [vmem:[%s7871_s3 + $0x248] sm:$0xf0] }
 0x121   :  { %v1546_v62 = vadd.f32 %v1545_v60, %v1533_v36  ;;  %v1558_v10 = vpop.f32.mrf.mxu1  ;;  %v4090_v37 = vor.u32 %v5077_v18, %v4089_v17  ;;  %v4369_v36 = vld [vmem:[%s7871_s3 + $0x238] sm:$0xf]  ;;  %v4646_v60 = vor.u32 %v5214_v53, %v4643_v55  ;;  %v5204_v17 = vld [vmem:[%s7871_s3 + $0x414] sm:$0xf]  ;;  %v4603_v18 = vld [vmem:[%s7871_s3 + $0x424] sm:$0xf0] }
 0x122   :  { %3079 = vmatpush.bf16.msra.mxu2 %v4726_v59  ;;  %3061 = vmatpush.bf16.msra.mxu1 %v4666_v45  ;;  %v4626_v59 = vor.u32 %v5209_v58, %v4623_v5  ;;  %v4606_v22 = vor.u32 %v5204_v17, %v4603_v18  ;;  %v4569_v45 = vld [vmem:[%s7871_s3 + $0x3c8] sm:$0xf]  ;;  %v4269_v53 = vld [vmem:[%s7871_s3 + $0x170] sm:$0xf]  ;;  %v5122_v55 = vld [vmem:[%s7871_s3 + $0x180] sm:$0xf0] }
 0x123   :  { %v1559_v8 = vadd.f32 %v1558_v10, %v1546_v62  ;;  %v4370_v62 = vor.u32 %v5147_v50, %v4369_v36  ;;  %v5197_v50 = vld [vmem:[%s7871_s3 + $0x3d8] sm:$0xf0]  ;;  %v4231_v58 = vld [vmem:[%s7871_s3 + $0x134] sm:$0xf0]  ;;  %v4211_v17 = vld [vmem:[%s7871_s3 + $0x10c] sm:$0xf0] }
 0x124   :  { %3090 = vmatpush.bf16.msra.mxu3 %v4130_v63  ;;  %v4650_v63 = vor.u32 %v5217_v61, %v4649_v56  ;;  %v5230_v61 = vld [vmem:[%s7871_s3 + $0x4e4] sm:$0xf] }
 0x126   :  { %3124 = vmatpush.bf16.msrb.mxu2 %v4710_v19  ;;  %3062 = vmatpush.bf16.msra.mxu1 %v4646_v60  ;;  %v4609_v19 = vld [vmem:[%s7871_s3 + $0x418] sm:$0xf]  ;;  %v4270_v60 = vor.u32 %v5122_v55, %v4269_v53  ;;  %v4549_v53 = vld [vmem:[%s7871_s3 + $0x3a0] sm:$0xf]  ;;  %v5192_v55 = vld [vmem:[%s7871_s3 + $0x3b0] sm:$0xf0] }
 0x127   :  { %v4610_v25 = vor.u32 %v5207_v15, %v4609_v19  ;;  %v5220_v19 = vld [vmem:[%s7871_s3 + $0x494] sm:$0xf] }
 0x128   :  { %v1571_v20 = vpop.f32.mrf.mxu2  ;;  %v1547_v28 = vpop.f32.mrf.mxu0  ;;  %3091 = vmatpush.bf16.msra.mxu3 %v4110_v16  ;;  %v5100_v15 = vld [vmem:[%s7871_s3 + $0xd4] sm:$0xf] }
 0x129   :  { %v1572_v23 = vadd.f32 %v1571_v20, %v1559_v8  ;;  %v1584_v32 = vpop.f32.mrf.mxu3  ;;  %v1560_v27 = vpop.f32.mrf.mxu1  ;;  %v5257_v8 = vld [vmem:[%s7871_s3 + $0x5b8] sm:$0xf0]  ;;  %v4789_v20 = vld [vmem:[%s7871_s3 + $0x580] sm:$0xf]  ;;  %v5132_v28 = vld [vmem:[%s7871_s3 + $0x1d0] sm:$0xf0] }
 0x12a   :  { %3125 = vmatpush.bf16.msrb.mxu2 %v4690_v34  ;;  %v4810_v16 = vor.u32 %v5257_v8, %v4809_v30  ;;  %3063 = vmatpush.bf16.msra.mxu1 %v4626_v59  ;;  %v4790_v29 = vor.u32 %v5252_v21, %v4789_v20  ;;  %v4583_v27 = vld [vmem:[%s7871_s3 + $0x3fc] sm:$0xf0]  ;;  %v5247_v34 = vld [vmem:[%s7871_s3 + $0x568] sm:$0xf0]  ;;  %v4310_v39 = vor.u32 %v5132_v28, %v4309_v26  ;;  %v4671_v20 = vld [vmem:[%s7871_s3 + $0x4a4] sm:$0xf0] }
 0x12b   :  { %v1585_v54 = vadd.f32 %v1584_v32, %v1572_v23  ;;  %v4330_v23 = vor.u32 %v5137_v14, %v4329_v13  ;;  %v5199_v32 = vld [vmem:[%s7871_s3 + $0x3ec] sm:$0xf]  ;;  %v4770_v4 = vor.u32 %v5247_v34, %v4769_v31  ;;  %v4674_v26 = vor.u32 %v5220_v19, %v4671_v20  ;;  %v4651_v31 = vld [vmem:[%s7871_s3 + $0x47c] sm:$0xf0]  ;;  %v4509_v19 = vld [vmem:[%s7871_s3 + $0x350] sm:$0xf] }
 0x12c   :  { %3092 = vmatpush.bf16.msra.mxu3 %v4090_v37  ;;  %v4589_v37 = vld [vmem:[%s7871_s3 + $0x3f0] sm:$0xf]  ;;  %v5095_v34 = vld [vmem:[%s7871_s3 + $0xac] sm:$0xf] }
 0x12d   :  { %v1656_v43 = vmax.f32 %v1585_v54, 0.0  ;;  %v4586_v54 = vor.u32 %v5199_v32, %v4583_v27  ;;  %v4590_v40 = vor.u32 %v5202_v38, %v4589_v37  ;;  %v5210_v38 = vld [vmem:[%s7871_s3 + $0x444] sm:$0xf] }
 0x12e   :  { %3126 = vmatpush.bf16.msrb.mxu2 %v4670_v24  ;;  %3064 = vmatpush.bf16.msra.mxu1 %v4606_v22 }
 0x12f   :  { %v7132_v49 = vpack.c.bf16 %v1656_v43, %v1656_v43  ;;  %3093 = vmatmul.bf16.vlgmr.msra.gmra.mxu3 %v6746_v3  ;;  %v5194_v43 = vld [vmem:[%s7871_s3 + $0x3c4] sm:$0xf] }
 0x130   :  { %3137 = vmatpush.bf16.msrb.mxu3 %v4870_v41  ;;  %v1573_v52 = vpop.f32.mrf.mxu2  ;;  %v4566_v36 = vor.u32 %v5194_v43, %v4563_v44  ;;  %v5205_v43 = vld [vmem:[%s7871_s3 + $0x41c] sm:$0xf]  ;;  %v4611_v44 = vld [vmem:[%s7871_s3 + $0x42c] sm:$0xf0] }
 0x131   :  { %3002 = vmatmul.bf16.vlgmr.msrb.gmra.mxu0 %v7132_v49  ;;  %v1586_v10 = vpop.f32.mrf.mxu3  ;;  %v4570_v52 = vor.u32 %v5197_v50, %v4569_v45 }
 0x132   :  { %3098 = vmatpush.bf16.msrb.mxu0 %v4390_v46  ;;  %3127 = vmatpush.bf16.msrb.mxu2 %v4650_v63  ;;  %v5242_v46 = vld [vmem:[%s7871_s3 + $0x540] sm:$0xf0]  ;;  %v4249_v63 = vld [vmem:[%s7871_s3 + $0x148] sm:$0xf] }
 0x133   :  { %3065 = vmatpush.bf16.msra.mxu1 %v4586_v54  ;;  %v4750_v56 = vor.u32 %v5242_v46, %v4749_v7  ;;  %v4250_v59 = vor.u32 %v5117_v0, %v4249_v63  ;;  %v4171_v54 = vld [vmem:[%s7871_s3 + $0xbc] sm:$0xf0]  ;;  %v5080_v63 = vld [vmem:[%s7871_s3 + $0x34] sm:$0xf]  ;;  %v4111_v0 = vld [vmem:[%s7871_s3 + $0x44] sm:$0xf0] }
 0x134   :  { %3138 = vmatpush.bf16.msrb.mxu3 %v4850_v51  ;;  %v4290_v51 = vor.u32 %v5127_v42, %v4289_v33  ;;  %v5090_v33 = vld [vmem:[%s7871_s3 + $0x84] sm:$0xf]  ;;  %v4151_v42 = vld [vmem:[%s7871_s3 + $0x94] sm:$0xf0] }
 0x135   :  { %v4154_v7 = vor.u32 %v5090_v33, %v4151_v42  ;;  %v5175_v33 = vld [vmem:[%s7871_s3 + $0x32c] sm:$0xf]  ;;  %v4491_v42 = vld [vmem:[%s7871_s3 + $0x33c] sm:$0xf0] }
 0x136   :  { %3099 = vmatpush.bf16.msrb.mxu0 %v4370_v62  ;;  %3128 = vmatpush.bf16.msrb.mxu2 %v4630_v12  ;;  %v4711_v62 = vld [vmem:[%s7871_s3 + $0x4f4] sm:$0xf0]  ;;  %v5275_v12 = vld [vmem:[%s7872_s2] sm:$0x1f] }
 0x137   :  { %3066 = vmatpush.bf16.msra.mxu1 %v4566_v36  ;;  %v4714_v6 = vor.u32 %v5230_v61, %v4711_v62  ;;  %v273_v13 = vperm.slane %v5275_v12, 4  ;;  %v4131_v36 = vld [vmem:[%s7871_s3 + $0x6c] sm:$0xf0]  ;;  %v5200_v61 = vld [vmem:[%s7871_s3 + $0x3f4] sm:$0xf] }
 0x138   :  { %3139 = vmatpush.bf16.msrb.mxu3 %v4830_v2  ;;  %v5110_v2 = vld [vmem:[%s7871_s3 + $0x124] sm:$0xf]  ;;  %v4591_v62 = vld [vmem:[%s7871_s3 + $0x404] sm:$0xf0] }
 0x139   :  { %v4234_v14 = vor.u32 %v5110_v2, %v4231_v58  ;;  %v4529_v58 = vld [vmem:[%s7871_s3 + $0x378] sm:$0xf]  ;;  %v4557_v12 = vld [vmem:[%s7871_s3 + $0x3a8] sm:$0xf] }
 0x13a   :  { %3100 = vmatpush.bf16.msrb.mxu0 %v4350_v11  ;;  %3129 = vmatpush.bf16.msrb.mxu2 %v4610_v25  ;;  %v4691_v11 = vld [vmem:[%s7871_s3 + $0x4cc] sm:$0xf0] }
 0x13b   :  { %v4694_v18 = vor.u32 %v5225_v9, %v4691_v11  ;;  %v4114_v9 = vor.u32 %v5080_v63, %v4111_v0  ;;  %v4571_v11 = vld [vmem:[%s7871_s3 + $0x3dc] sm:$0xf0]  ;;  %v4449_v63 = vld [vmem:[%s7871_s3 + $0x2d8] sm:$0xf]  ;;  %v5167_v0 = vld [vmem:[%s7871_s3 + $0x2e8] sm:$0xf0] }
 0x13c   :  { %3140 = vmatpush.bf16.msrb.mxu3 %v4810_v16  ;;  %v5105_v16 = vld [vmem:[%s7871_s3 + $0xfc] sm:$0xf] }
 0x13d   :  { %v4214_v22 = vor.u32 %v5105_v16, %v4211_v17  ;;  %v5075_v17 = vld [vmem:[%s7871_s3 + $0xc] sm:$0xf] }
 0x13e   :  { %3101 = vmatpush.bf16.msrb.mxu0 %v4330_v23  ;;  %3130 = vmatpush.bf16.msrb.mxu2 %v4590_v40  ;;  %v4191_v23 = vld [vmem:[%s7871_s3 + $0xe4] sm:$0xf0] }
 0x13f   :  { %v4194_v27 = vor.u32 %v5100_v15, %v4191_v23  ;;  %v5270_v15 = vld [vmem:[%s7871_s3 + $0x624] sm:$0xf]  ;;  %v4871_v23 = vld [vmem:[%s7871_s3 + $0x634] sm:$0xf0] }
 0x140   :  { %v1597_v41 = vpop.f32.mrf.mxu0  ;;  %3141 = vmatpush.bf16.msrb.mxu3 %v4790_v29  ;;  %v5215_v29 = vld [vmem:[%s7871_s3 + $0x46c] sm:$0xf] }
 0x141   :  { %3054 = vmatmul.bf16.vlgmr.msra.gmra.mxu0 %v6968_v35  ;;  %v1610_v24 = vpop.f32.mrf.mxu1  ;;  %v1598_v21 = vadd.f32 %v1597_v41, %v273_v13  ;;  %v4654_v37 = vor.u32 %v5215_v29, %v4651_v31  ;;  %v4174_v41 = vor.u32 %v5095_v34, %v4171_v54  ;;  %v5193_v13 = vld [vmem:[%s7871_s3 + $0x3b8] sm:$0xf0]  ;;  %v4537_v34 = vld [vmem:[%s7871_s3 + $0x380] sm:$0xf]  ;;  %v5188_v54 = vld [vmem:[%s7871_s3 + $0x390] sm:$0xf0] }
 0x142   :  { %3102 = vmatpush.bf16.msrb.mxu0 %v4310_v39  ;;  %3131 = vmatpush.bf16.msrb.mxu2 %v4570_v52  ;;  %v4631_v39 = vld [vmem:[%s7871_s3 + $0x454] sm:$0xf0]  ;;  %v4614_v52 = vor.u32 %v5205_v43, %v4611_v44  ;;  %v4558_v29 = vor.u32 %v5193_v13, %v4557_v12  ;;  %v4538_v43 = vor.u32 %v5188_v54, %v4537_v34  ;;  %v4477_v12 = vld [vmem:[%s7871_s3 + $0x308] sm:$0xf]  ;;  %v5173_v13 = vld [vmem:[%s7871_s3 + $0x318] sm:$0xf0] }
 0x143   :  { %v1611_v32 = vadd.f32 %v1610_v24, %v1598_v21  ;;  %v5085_v24 = vld [vmem:[%s7871_s3 + $0x5c] sm:$0xf] }
 0x144   :  { %3142 = vmatpush.bf16.msrb.mxu3 %v4770_v4  ;;  %v4634_v4 = vor.u32 %v5210_v38, %v4631_v39  ;;  %v5177_v39 = vld [vmem:[%s7871_s3 + $0x338] sm:$0xf0] }
 0x145   :  { %v5245_v54 = vld [vmem:[%s7871_s3 + $0x55c] sm:$0xf] }
 0x146   :  { %3103 = vmatpush.bf16.msrb.mxu0 %v4290_v51 }
 0x148   :  { %v1599_v10 = vpop.f32.mrf.mxu0  ;;  %3143 = vmatpush.bf16.msrb.mxu3 %v4750_v56  ;;  %v1623_v5 = vpop.f32.mrf.mxu2  ;;  %v5190_v56 = vld [vmem:[%s7871_s3 + $0x3a4] sm:$0xf] }
 0x149   :  { %v1636_v30 = vpop.f32.mrf.mxu3  ;;  %v1612_v8 = vpop.f32.mrf.mxu1  ;;  %v1624_v40 = vadd.f32 %v1623_v5, %v1611_v32  ;;  %v4550_v10 = vor.u32 %v5192_v55, %v4549_v53  ;;  %v4554_v2 = vor.u32 %v5190_v56, %v4551_v57  ;;  %v5187_v5 = vld [vmem:[%s7871_s3 + $0x388] sm:$0xf0]  ;;  %v5170_v53 = vld [vmem:[%s7871_s3 + $0x304] sm:$0xf]  ;;  %v4471_v55 = vld [vmem:[%s7871_s3 + $0x314] sm:$0xf0] }
 0x14a   :  { %3104 = vmatpush.bf16.msrb.mxu0 %v4270_v60  ;;  %v4134_v60 = vor.u32 %v5085_v24, %v4131_v36  ;;  %v4531_v8 = vld [vmem:[%s7871_s3 + $0x38c] sm:$0xf0]  ;;  %v4530_v16 = vor.u32 %v5187_v5, %v4529_v58  ;;  %v4494_v24 = vor.u32 %v5175_v33, %v4491_v42  ;;  %v4469_v36 = vld [vmem:[%s7871_s3 + $0x300] sm:$0xf]  ;;  %v5260_v57 = vld [vmem:[%s7871_s3 + $0x5d4] sm:$0xf] }
 0x14b   :  { %v1637_v45 = vadd.f32 %v1636_v30, %v1624_v40  ;;  %v5185_v30 = vld [vmem:[%s7871_s3 + $0x37c] sm:$0xf]  ;;  %v4397_v33 = vld [vmem:[%s7871_s3 + $0x268] sm:$0xf] }
 0x14c   :  { %3144 = vmatpush.bf16.msrb.mxu3 %v4730_v1  ;;  %v4534_v21 = vor.u32 %v5185_v30, %v4531_v8  ;;  %v5265_v40 = vld [vmem:[%s7871_s3 + $0x5fc] sm:$0xf] }
 0x14d   :  { %v5165_v5 = vld [vmem:[%s7871_s3 + $0x2dc] sm:$0xf] }
 0x14e   :  { %3105 = vmatpush.bf16.msrb.mxu0 %v4250_v59  ;;  %v5195_v59 = vld [vmem:[%s7871_s3 + $0x3cc] sm:$0xf]  ;;  %v5153_v42 = vld [vmem:[%s7871_s3 + $0x278] sm:$0xf0] }
 0x150   :  { %3189 = vmatpush.bf16.msra.mxu3 %v4714_v6  ;;  %v1625_v25 = vpop.f32.mrf.mxu2  ;;  %v4594_v6 = vor.u32 %v5200_v61, %v4591_v62  ;;  %v4497_v61 = vld [vmem:[%s7871_s3 + $0x330] sm:$0xf]  ;;  %v5178_v62 = vld [vmem:[%s7871_s3 + $0x340] sm:$0xf0] }
 0x151   :  { %3106 = vmatmul.bf16.vlgmr.msrb.gmra.mxu0 %v6825_v48  ;;  %v1638_v28 = vpop.f32.mrf.mxu3  ;;  %v4574_v25 = vor.u32 %v5195_v59, %v4571_v11  ;;  %v4498_v8 = vor.u32 %v5178_v62, %v4497_v61  ;;  %v5255_v59 = vld [vmem:[%s7871_s3 + $0x5ac] sm:$0xf]  ;;  %v4450_v11 = vor.u32 %v5167_v0, %v4449_v63  ;;  %v5158_v61 = vld [vmem:[%s7871_s3 + $0x2a0] sm:$0xf0] }
 0x152   :  { %3150 = vmatpush.bf16.msra.mxu0 %v4234_v14  ;;  %v4511_v28 = vld [vmem:[%s7871_s3 + $0x364] sm:$0xf0]  ;;  %v5235_v0 = vld [vmem:[%s7871_s3 + $0x50c] sm:$0xf] }
 0x154   :  { %3190 = vmatpush.bf16.msra.mxu3 %v4694_v18  ;;  %v4091_v18 = vld [vmem:[%s7871_s3 + $0x1c] sm:$0xf0] }
 0x155   :  { %v4094_v31 = vor.u32 %v5075_v17, %v4091_v18  ;;  %v5162_v17 = vld [vmem:[%s7871_s3 + $0x2c0] sm:$0xf0] }
 0x156   :  { %3151 = vmatpush.bf16.msra.mxu0 %v4214_v22  ;;  %v5182_v22 = vld [vmem:[%s7871_s3 + $0x360] sm:$0xf0] }
 0x157   :  { %v4510_v32 = vor.u32 %v5182_v22, %v4509_v19  ;;  %v5160_v19 = vld [vmem:[%s7871_s3 + $0x2b4] sm:$0xf]  ;;  %v5250_v22 = vld [vmem:[%s7871_s3 + $0x584] sm:$0xf] }
 0x158   :  { %3191 = vmatpush.bf16.msra.mxu3 %v4674_v26  ;;  %v5180_v26 = vld [vmem:[%s7871_s3 + $0x354] sm:$0xf] }
 0x159   :  { %v4514_v38 = vor.u32 %v5180_v26, %v4511_v28  ;;  %v5168_v26 = vld [vmem:[%s7871_s3 + $0x2f0] sm:$0xf0]  ;;  %v4409_v28 = vld [vmem:[%s7871_s3 + $0x288] sm:$0xf] }
 0x15a   :  { %3152 = vmatpush.bf16.msra.mxu0 %v4194_v27  ;;  %v4874_v27 = vor.u32 %v5270_v15, %v4871_v23  ;;  %v4791_v15 = vld [vmem:[%s7871_s3 + $0x594] sm:$0xf0] }
 0x15b   :  { %v4794_v34 = vor.u32 %v5250_v22, %v4791_v15  ;;  %v5228_v22 = vld [vmem:[%s7871_s3 + $0x4d0] sm:$0xf0] }
 0x15c   :  { %3192 = vmatpush.bf16.msra.mxu3 %v4654_v37  ;;  %v4489_v37 = vld [vmem:[%s7871_s3 + $0x328] sm:$0xf] }
 0x15d   :  { %v4490_v44 = vor.u32 %v5177_v39, %v4489_v37  ;;  %v5150_v37 = vld [vmem:[%s7871_s3 + $0x264] sm:$0xf] }
 0x15e   :  { %3153 = vmatpush.bf16.msra.mxu0 %v4174_v41  ;;  %v4851_v41 = vld [vmem:[%s7871_s3 + $0x60c] sm:$0xf0] }
 0x160   :  { %v1649_v46 = vpop.f32.mrf.mxu0  ;;  %3193 = vmatpush.bf16.msra.mxu3 %v4634_v4  ;;  %v7457_v4 = vld [vmem:[%s7873_s4] sm:$0x1f] }
 0x161   :  { %v1650_v50 = vadd.f32 %v1649_v46, %v1637_v45  ;;  %v7351_v51 = vpop.f32.mrf.mxu1  ;;  %v4854_v45 = vor.u32 %v5265_v40, %v4851_v41  ;;  %v5183_v46 = vld [vmem:[%s7871_s3 + $0x368] sm:$0xf0]  ;;  %v4771_v41 = vld [vmem:[%s7871_s3 + $0x56c] sm:$0xf0] }
 0x162   :  { %3154 = vmatpush.bf16.msra.mxu0 %v4154_v7  ;;  %v4517_v7 = vld [vmem:[%s7871_s3 + $0x358] sm:$0xf] }
 0x163   :  { %v1657_v47 = vmax.f32 %v1650_v50, 0.0  ;;  %v5172_v50 = vld [vmem:[%s7871_s3 + $0x310] sm:$0xf0]  ;;  %v4518_v56 = vor.u32 %v5183_v46, %v4517_v7 }
 0x164   :  { %3194 = vmatpush.bf16.msra.mxu3 %v4614_v52  ;;  %v1905_v52 = vperm.slane %v7457_v4, 0 }
 0x165   :  { %v7377_v1 = vpack.c.bf16 %v1657_v47, %v1657_v47  ;;  %v4831_v47 = vld [vmem:[%s7871_s3 + $0x5e4] sm:$0xf0] }
 0x166   :  { %3155 = vmatpush.bf16.msra.mxu0 %v4134_v60  ;;  %v4470_v60 = vor.u32 %v5172_v50, %v4469_v36  ;;  %v4834_v58 = vor.u32 %v5260_v57, %v4831_v47  ;;  %v4398_v36 = vor.u32 %v5153_v42, %v4397_v33  ;;  %v5240_v50 = vld [vmem:[%s7871_s3 + $0x534] sm:$0xf]  ;;  %v4377_v57 = vld [vmem:[%s7871_s3 + $0x240] sm:$0xf]  ;;  %v4657_v33 = vld [vmem:[%s7871_s3 + $0x470] sm:$0xf] }
 0x167   :  { %3015 = vmatmul.bf16.vlgmr.msrb.gmra.mxu1 %v7377_v1  ;;  %3080 = vmatmul.bf16.vlgmr.msra.gmra.mxu2 %v7377_v1  ;;  %v5148_v47 = vld [vmem:[%s7871_s3 + $0x250] sm:$0xf0]  ;;  %v5218_v42 = vld [vmem:[%s7871_s3 + $0x480] sm:$0xf0] }
 0x168   :  { %3111 = vmatpush.bf16.msrb.mxu1 %v4550_v10  ;;  %v1651_v14 = vpop.f32.mrf.mxu0  ;;  %3145 = vmatmul.bf16.vlgmr.msrb.gmra.mxu3 %v7377_v1  ;;  %v4474_v10 = vor.u32 %v5170_v53, %v4471_v55  ;;  %v4371_v53 = vld [vmem:[%s7871_s3 + $0x24c] sm:$0xf0]  ;;  %v4378_v63 = vor.u32 %v5148_v47, %v4377_v57  ;;  %v5115_v47 = vld [vmem:[%s7871_s3 + $0x14c] sm:$0xf] }
 0x169   :  { %3176 = vmatpush.bf16.msra.mxu2 %v4554_v2  ;;  %v2966_v20 = vpop.f32.mrf.mxu1  ;;  %3195 = vmatpush.bf16.msra.mxu3 %v4594_v6  ;;  %v2965_v2 = vadd.f32 %v7351_v51, %v1905_v52  ;;  %v4451_v6 = vld [vmem:[%s7871_s3 + $0x2ec] sm:$0xf0]  ;;  %v4811_v51 = vld [vmem:[%s7871_s3 + $0x5bc] sm:$0xf0]  ;;  %v5145_v52 = vld [vmem:[%s7871_s3 + $0x23c] sm:$0xf] }
 0x16a   :  { %3156 = vmatpush.bf16.msra.mxu0 %v4114_v9  ;;  %v4454_v14 = vor.u32 %v5165_v5, %v4451_v6  ;;  %v4814_v18 = vor.u32 %v5255_v59, %v4811_v51  ;;  %v4431_v20 = vld [vmem:[%s7871_s3 + $0x2c4] sm:$0xf0]  ;;  %v4374_v62 = vor.u32 %v5145_v52, %v4371_v53  ;;  %v5143_v59 = vld [vmem:[%s7871_s3 + $0x228] sm:$0xf0]  ;;  %v5213_v52 = vld [vmem:[%s7871_s3 + $0x458] sm:$0xf0] }
 0x16b   :  { %v4717_v51 = vld [vmem:[%s7871_s3 + $0x4e8] sm:$0xf] }
 0x16c   :  { %3112 = vmatpush.bf16.msrb.mxu1 %v4530_v16  ;;  %v2977_v30 = vpop.f32.mrf.mxu2  ;;  %v4429_v16 = vld [vmem:[%s7871_s3 + $0x2b0] sm:$0xf] }
 0x16d   :  { %3177 = vmatpush.bf16.msra.mxu2 %v4534_v21  ;;  %3196 = vmatpush.bf16.msra.mxu3 %v4574_v25  ;;  %v7512_v9 = vadd.f32 %v2977_v30, %v2965_v2  ;;  %v4478_v21 = vor.u32 %v5173_v13, %v4477_v12  ;;  %v4430_v23 = vor.u32 %v5162_v17, %v4429_v16  ;;  %v4457_v25 = vld [vmem:[%s7871_s3 + $0x2e0] sm:$0xf]  ;;  %v5140_v2 = vld [vmem:[%s7871_s3 + $0x214] sm:$0xf]  ;;  %v5135_v16 = vld [vmem:[%s7871_s3 + $0x1ec] sm:$0xf] }
 0x16e   :  { %3157 = vmatpush.bf16.msra.mxu0 %v4094_v31  ;;  %v5157_v31 = vld [vmem:[%s7871_s3 + $0x298] sm:$0xf0]  ;;  %v4458_v40 = vor.u32 %v5168_v26, %v4457_v25  ;;  %v4731_v30 = vld [vmem:[%s7871_s3 + $0x51c] sm:$0xf0]  ;;  %v5130_v25 = vld [vmem:[%s7871_s3 + $0x1c4] sm:$0xf] }
 0x16f   :  { %v4734_v13 = vor.u32 %v5235_v0, %v4731_v30  ;;  %v4331_v17 = vld [vmem:[%s7871_s3 + $0x1fc] sm:$0xf0]  ;;  %v4311_v26 = vld [vmem:[%s7871_s3 + $0x1d4] sm:$0xf0] }
 0x170   :  { %3113 = vmatpush.bf16.msrb.mxu1 %v4510_v32  ;;  %v5155_v32 = vld [vmem:[%s7871_s3 + $0x28c] sm:$0xf]  ;;  %v4334_v15 = vor.u32 %v5135_v16, %v4331_v17  ;;  %v4617_v0 = vld [vmem:[%s7871_s3 + $0x420] sm:$0xf]  ;;  %v4197_v17 = vld [vmem:[%s7871_s3 + $0xd8] sm:$0xf] }
 0x171   :  { %3241 = vmatpush.bf16.msrb.mxu3 %v4558_v29  ;;  %3178 = vmatpush.bf16.msra.mxu2 %v4514_v38  ;;  %v4434_v29 = vor.u32 %v5160_v19, %v4431_v20  ;;  %v4391_v38 = vld [vmem:[%s7871_s3 + $0x274] sm:$0xf0]  ;;  %v4337_v19 = vld [vmem:[%s7871_s3 + $0x1f0] sm:$0xf]  ;;  %v5138_v20 = vld [vmem:[%s7871_s3 + $0x200] sm:$0xf0] }
 0x172   :  { %3202 = vmatpush.bf16.msrb.mxu0 %v4874_v27  ;;  %v4411_v27 = vld [vmem:[%s7871_s3 + $0x29c] sm:$0xf0]  ;;  %v4394_v46 = vor.u32 %v5150_v37, %v4391_v38  ;;  %v5125_v37 = vld [vmem:[%s7871_s3 + $0x19c] sm:$0xf]  ;;  %v4291_v38 = vld [vmem:[%s7871_s3 + $0x1ac] sm:$0xf0] }
 0x173   :  { %3158 = vmatmul.bf16.vlgmr.msra.gmra.mxu0 %v6746_v3  ;;  %v4414_v7 = vor.u32 %v5155_v32, %v4411_v27  ;;  %v5133_v32 = vld [vmem:[%s7871_s3 + $0x1d8] sm:$0xf0]  ;;  %v4677_v27 = vld [vmem:[%s7871_s3 + $0x498] sm:$0xf] }
 0x174   :  { %3114 = vmatpush.bf16.msrb.mxu1 %v4490_v44  ;;  %v2979_v39 = vpop.f32.mrf.mxu2  ;;  %v4437_v44 = vld [vmem:[%s7871_s3 + $0x2b8] sm:$0xf] }
 0x175   :  { %3242 = vmatpush.bf16.msrb.mxu3 %v4538_v43  ;;  %3179 = vmatpush.bf16.msra.mxu2 %v4494_v24  ;;  %v4410_v43 = vor.u32 %v5157_v31, %v4409_v28  ;;  %v4774_v24 = vor.u32 %v5245_v54, %v4771_v41  ;;  %v4317_v31 = vld [vmem:[%s7871_s3 + $0x1c8] sm:$0xf]  ;;  %v5128_v41 = vld [vmem:[%s7871_s3 + $0x1b0] sm:$0xf0] }
 0x176   :  { %3203 = vmatpush.bf16.msrb.mxu0 %v4854_v45  ;;  %v5163_v45 = vld [vmem:[%s7871_s3 + $0x2c8] sm:$0xf0]  ;;  %v4318_v54 = vor.u32 %v5133_v32, %v4317_v31  ;;  %v5093_v32 = vld [vmem:[%s7871_s3 + $0x98] sm:$0xf0] }
 0x177   :  { %3067 = vmatmul.bf16.vlgmr.msra.gmra.mxu1 %v7132_v49  ;;  %3132 = vmatmul.bf16.vlgmr.msrb.gmra.mxu2 %v7132_v49  ;;  %v4438_v55 = vor.u32 %v5163_v45, %v4437_v44  ;;  %v5120_v45 = vld [vmem:[%s7871_s3 + $0x174] sm:$0xf] }
 0x178   :  { %3115 = vmatpush.bf16.msrb.mxu1 %v4470_v60  ;;  %3197 = vmatmul.bf16.vlgmr.msra.gmra.mxu3 %v7132_v49  ;;  %v4417_v60 = vld [vmem:[%s7871_s3 + $0x290] sm:$0xf] }
 0x179   :  { %3243 = vmatpush.bf16.msrb.mxu3 %v4518_v56  ;;  %3180 = vmatpush.bf16.msra.mxu2 %v4474_v10  ;;  %v4751_v56 = vld [vmem:[%s7871_s3 + $0x544] sm:$0xf0]  ;;  %v4418_v6 = vor.u32 %v5158_v61, %v4417_v60  ;;  %v4251_v60 = vld [vmem:[%s7871_s3 + $0x15c] sm:$0xf0]  ;;  %v4257_v61 = vld [vmem:[%s7871_s3 + $0x150] sm:$0xf] }
 0x17a   :  { %3204 = vmatpush.bf16.msrb.mxu0 %v4834_v58  ;;  %v4754_v10 = vor.u32 %v5240_v50, %v4751_v56  ;;  %v4351_v58 = vld [vmem:[%s7871_s3 + $0x224] sm:$0xf0] }
 0x17b   :  { %v4354_v12 = vor.u32 %v5140_v2, %v4351_v58  ;;  %v4637_v50 = vld [vmem:[%s7871_s3 + $0x448] sm:$0xf]  ;;  %v5208_v2 = vld [vmem:[%s7871_s3 + $0x430] sm:$0xf0]  ;;  %v4254_v58 = vor.u32 %v5115_v47, %v4251_v60  ;;  %v4817_v47 = vld [vmem:[%s7871_s3 + $0x5b0] sm:$0xf] }
 0x17c   :  { %3116 = vmatpush.bf16.msrb.mxu1 %v4450_v11  ;;  %v5233_v11 = vld [vmem:[%s7871_s3 + $0x4f8] sm:$0xf0]  ;;  %v5258_v60 = vld [vmem:[%s7871_s3 + $0x5c0] sm:$0xf0] }
 0x17d   :  { %3244 = vmatpush.bf16.msrb.mxu3 %v4498_v8  ;;  %3181 = vmatpush.bf16.msra.mxu2 %v4454_v14  ;;  %v4357_v8 = vld [vmem:[%s7871_s3 + $0x218] sm:$0xf] }
 0x17e   :  { %3205 = vmatpush.bf16.msrb.mxu0 %v4814_v18  ;;  %v4358_v14 = vor.u32 %v5143_v59, %v4357_v8  ;;  %v4718_v18 = vor.u32 %v5233_v11, %v4717_v51  ;;  %v4618_v8 = vor.u32 %v5208_v2, %v4617_v0  ;;  %v4217_v59 = vld [vmem:[%s7871_s3 + $0x100] sm:$0xf]  ;;  %v5108_v51 = vld [vmem:[%s7871_s3 + $0x110] sm:$0xf0]  ;;  %v4597_v11 = vld [vmem:[%s7871_s3 + $0x3f8] sm:$0xf] }
 0x17f   :  { %v5248_v0 = vld [vmem:[%s7871_s3 + $0x570] sm:$0xf0] }
 0x180   :  { %3117 = vmatpush.bf16.msrb.mxu1 %v4430_v23  ;;  %v4338_v23 = vor.u32 %v5138_v20, %v4337_v19  ;;  %v1906_v19 = vperm.slane %v7457_v4, 1  ;;  %v4577_v20 = vld [vmem:[%s7871_s3 + $0x3d0] sm:$0xf] }
 0x181   :  { %3245 = vmatpush.bf16.msrb.mxu3 %v4478_v21  ;;  %3182 = vmatpush.bf16.msra.mxu2 %v4434_v29  ;;  %v4697_v21 = vld [vmem:[%s7871_s3 + $0x4c0] sm:$0xf] }
 0x182   :  { %3206 = vmatpush.bf16.msrb.mxu0 %v4794_v34  ;;  %v4698_v29 = vor.u32 %v5228_v22, %v4697_v21  ;;  %v5223_v34 = vld [vmem:[%s7871_s3 + $0x4a8] sm:$0xf0]  ;;  %v5198_v21 = vld [vmem:[%s7871_s3 + $0x3e0] sm:$0xf0] }
 0x183   :  { %v4678_v39 = vor.u32 %v5223_v34, %v4677_v27  ;;  %v5088_v34 = vld [vmem:[%s7871_s3 + $0x70] sm:$0xf0] }
 0x184   :  { %3118 = vmatpush.bf16.msrb.mxu1 %v4410_v43  ;;  %v4294_v43 = vor.u32 %v5125_v37, %v4291_v38  ;;  %v4117_v38 = vld [vmem:[%s7871_s3 + $0x38] sm:$0xf] }
 0x185   :  { %3246 = vmatpush.bf16.msrb.mxu3 %v4458_v40  ;;  %3183 = vmatpush.bf16.msra.mxu2 %v4414_v7  ;;  %v4297_v40 = vld [vmem:[%s7871_s3 + $0x1a0] sm:$0xf]  ;;  %v4271_v7 = vld [vmem:[%s7871_s3 + $0x184] sm:$0xf0] }
 0x186   :  { %3207 = vmatpush.bf16.msrb.mxu0 %v4774_v24  ;;  %v4298_v44 = vor.u32 %v5128_v41, %v4297_v40  ;;  %v4277_v24 = vld [vmem:[%s7871_s3 + $0x178] sm:$0xf]  ;;  %v4097_v40 = vld [vmem:[%s7871_s3 + $0x10] sm:$0xf]  ;;  %v5078_v41 = vld [vmem:[%s7871_s3 + $0x20] sm:$0xf0] }
 0x187   :  { %3119 = vmatmul.bf16.vlgmr.msrb.gmra.mxu1 %v6968_v35 }
 0x188   :  { %3163 = vmatpush.bf16.msra.mxu1 %v4394_v46  ;;  %v7615_v5 = vpop.f32.mrf.mxu2  ;;  %3184 = vmatmul.bf16.vlgmr.msra.gmra.mxu2 %v6968_v35  ;;  %v4658_v46 = vor.u32 %v5218_v42, %v4657_v33  ;;  %v4877_v33 = vld [vmem:[%s7871_s3 + $0x628] sm:$0xf]  ;;  %v5273_v42 = vld [vmem:[%s7871_s3 + $0x638] sm:$0xf0] }
 0x189   :  { %3228 = vmatpush.bf16.msrb.mxu2 %v4398_v36  ;;  %3247 = vmatpush.bf16.msrb.mxu3 %v4438_v55  ;;  %v5123_v36 = vld [vmem:[%s7871_s3 + $0x188] sm:$0xf0]  ;;  %v4274_v55 = vor.u32 %v5120_v45, %v4271_v7  ;;  %v4098_v45 = vor.u32 %v5078_v41, %v4097_v40  ;;  %v4878_v7 = vor.u32 %v5273_v42, %v4877_v33 }
 0x18a   :  { %3208 = vmatpush.bf16.msrb.mxu0 %v4754_v10  ;;  %v4278_v57 = vor.u32 %v5123_v36, %v4277_v24  ;;  %v4237_v10 = vld [vmem:[%s7871_s3 + $0x128] sm:$0xf]  ;;  %v5268_v24 = vld [vmem:[%s7871_s3 + $0x610] sm:$0xf0] }
 0x18c   :  { %3164 = vmatpush.bf16.msra.mxu1 %v4374_v62  ;;  %v4638_v62 = vor.u32 %v5213_v52, %v4637_v50  ;;  %v4837_v50 = vld [vmem:[%s7871_s3 + $0x5d8] sm:$0xf]  ;;  %v5263_v52 = vld [vmem:[%s7871_s3 + $0x5e8] sm:$0xf0] }
 0x18d   :  { %3229 = vmatpush.bf16.msrb.mxu2 %v4378_v63  ;;  %3248 = vmatpush.bf16.msrb.mxu3 %v4418_v6  ;;  %v5113_v63 = vld [vmem:[%s7871_s3 + $0x138] sm:$0xf0] }
 0x18e   :  { %3209 = vmatpush.bf16.msrb.mxu0 %v4734_v13  ;;  %v4238_v30 = vor.u32 %v5113_v63, %v4237_v10  ;;  %v4777_v63 = vld [vmem:[%s7871_s3 + $0x560] sm:$0xf] }
 0x18f   :  { %v4778_v2 = vor.u32 %v5248_v0, %v4777_v63 }
 0x190   :  { %3165 = vmatpush.bf16.msra.mxu1 %v4354_v12  ;;  %3249 = vmatmul.bf16.vlgmr.msrb.gmra.mxu3 %v6968_v35  ;;  %v3031_v28 = vpop.f32.mrf.mxu2  ;;  %v4314_v35 = vor.u32 %v5130_v25, %v4311_v26  ;;  %v5203_v12 = vld [vmem:[%s7871_s3 + $0x408] sm:$0xf0]  ;;  %v5098_v25 = vld [vmem:[%s7871_s3 + $0xc0] sm:$0xf0]  ;;  %v3030_v26 = vadd.f32 %v7615_v5, %v1906_v19  ;;  %v4137_v5 = vld [vmem:[%s7871_s3 + $0x60] sm:$0xf] }
 0x191   :  { %3230 = vmatpush.bf16.msrb.mxu2 %v4358_v14  ;;  %3210 = vmatmul.bf16.vlgmr.msrb.gmra.mxu0 %v7377_v1  ;;  %v4218_v14 = vor.u32 %v5108_v51, %v4217_v59  ;;  %v4598_v16 = vor.u32 %v5203_v12, %v4597_v11  ;;  %v4138_v37 = vor.u32 %v5088_v34, %v4137_v5  ;;  %v4737_v59 = vld [vmem:[%s7871_s3 + $0x510] sm:$0xf]  ;;  %v5238_v51 = vld [vmem:[%s7871_s3 + $0x520] sm:$0xf0] }
 0x192   :  { %3254 = vmatpush.bf16.msra.mxu0 %v4718_v18  ;;  %v2990_v53 = vpop.f32.mrf.mxu3  ;;  %v5103_v18 = vld [vmem:[%s7871_s3 + $0xe8] sm:$0xf0]  ;;  %v4738_v11 = vor.u32 %v5238_v51, %v4737_v59 }
 0x193   :  { %v7708_v56 = vadd.f32 %v2990_v53, %v7512_v9  ;;  %v5118_v9 = vld [vmem:[%s7871_s3 + $0x160] sm:$0xf0]  ;;  %v4198_v22 = vor.u32 %v5103_v18, %v4197_v17 }
 0x194   :  { %3166 = vmatpush.bf16.msra.mxu1 %v4334_v15  ;;  %v4258_v6 = vor.u32 %v5118_v9, %v4257_v61  ;;  %v4578_v15 = vor.u32 %v5198_v21, %v4577_v20  ;;  %v4818_v61 = vor.u32 %v5258_v60, %v4817_v47 }
 0x195   :  { %3231 = vmatpush.bf16.msrb.mxu2 %v4338_v23  ;;  %v4177_v23 = vld [vmem:[%s7871_s3 + $0xb0] sm:$0xf] }
 0x196   :  { %3255 = vmatpush.bf16.msra.mxu0 %v4698_v29  ;;  %v4178_v31 = vor.u32 %v5098_v25, %v4177_v23 }
 0x198   :  { %3167 = vmatpush.bf16.msra.mxu1 %v4314_v35 }
 0x199   :  { %3232 = vmatpush.bf16.msrb.mxu2 %v4318_v54 }
 0x19a   :  { %3256 = vmatpush.bf16.msra.mxu0 %v4678_v39  ;;  %v2992_v13 = vpop.f32.mrf.mxu3 }
 0x19c   :  { %3168 = vmatpush.bf16.msra.mxu1 %v4294_v43 }
 0x19d   :  { %3233 = vmatpush.bf16.msrb.mxu2 %v4298_v44 }
 0x19e   :  { %3257 = vmatpush.bf16.msra.mxu0 %v4658_v46  ;;  %v4857_v46 = vld [vmem:[%s7871_s3 + $0x600] sm:$0xf] }
 0x19f   :  { %v4858_v36 = vor.u32 %v5268_v24, %v4857_v46 }
 0x1a0   :  { %3169 = vmatpush.bf16.msra.mxu1 %v4274_v55 }
 0x1a1   :  { %3234 = vmatpush.bf16.msrb.mxu2 %v4278_v57  ;;  %v4838_v57 = vor.u32 %v5263_v52, %v4837_v50 }
 0x1a2   :  { %3258 = vmatpush.bf16.msra.mxu0 %v4638_v62  ;;  %v3042_v28 = vpop.f32.mrf.mxu3  ;;  %v4797_v62 = vld [vmem:[%s7871_s3 + $0x588] sm:$0xf] }
 0x1a3   :  { %v7768_v29 = vadd.f32 %v3042_v28, %v3030_v26 }
 0x1a4   :  { %3170 = vmatpush.bf16.msra.mxu1 %v4254_v58  ;;  %v4757_v58 = vld [vmem:[%s7871_s3 + $0x538] sm:$0xf] }
 0x1a5   :  { %3235 = vmatpush.bf16.msrb.mxu2 %v4258_v6  ;;  %v5243_v6 = vld [vmem:[%s7871_s3 + $0x548] sm:$0xf0] }
 0x1a6   :  { %3259 = vmatpush.bf16.msra.mxu0 %v4618_v8  ;;  %v4758_v8 = vor.u32 %v5243_v6, %v4757_v58 }
 0x1a7   :  { %3171 = vmatmul.bf16.vlgmr.msra.gmra.mxu1 %v6825_v48 }
 0x1a8   :  { %3215 = vmatpush.bf16.msrb.mxu1 %v4238_v30  ;;  %3236 = vmatmul.bf16.vlgmr.msrb.gmra.mxu2 %v6825_v48  ;;  %v4157_v48 = vld [vmem:[%s7871_s3 + $0x88] sm:$0xf] }
 0x1a9   :  { %v4158_v27 = vor.u32 %v5093_v32, %v4157_v48 }
 0x1aa   :  { %3260 = vmatpush.bf16.msra.mxu0 %v4598_v16  ;;  %v3044_v35 = vpop.f32.mrf.mxu3 }
 0x1ac   :  { %3216 = vmatpush.bf16.msrb.mxu1 %v4218_v14 }
 0x1ae   :  { %3261 = vmatpush.bf16.msra.mxu0 %v4578_v15  ;;  %v3003_v54 = vpop.f32.mrf.mxu0 }
 0x1af   :  { %v3004_v13 = vadd.f32 %v3003_v54, %v7708_v56 }
 0x1b0   :  { %3217 = vmatpush.bf16.msrb.mxu1 %v4198_v22 }
 0x1b1   :  { %3262 = vmatmul.bf16.vlgmr.msra.gmra.mxu0 %v7132_v49  ;;  %v5083_v49 = vld [vmem:[%s7871_s3 + $0x48] sm:$0xf0] }
 0x1b2   :  { %v4118_v39 = vor.u32 %v5083_v49, %v4117_v38  ;;  %v7801_v43 = vpop.f32.mrf.mxu3 }
 0x1b4   :  { %3218 = vmatpush.bf16.msrb.mxu1 %v4178_v31 }
 0x1b6   :  { %v3005_v44 = vpop.f32.mrf.mxu0 }
 0x1b8   :  { %3219 = vmatpush.bf16.msrb.mxu1 %v4158_v27  ;;  %v1907_v27 = vperm.slane %v7457_v4, 2 }
 0x1ba   :  { %v3096_v53 = vpop.f32.mrf.mxu3  ;;  %v3095_v5 = vadd.f32 %v7801_v43, %v1907_v27  ;;  %v1908_v43 = vperm.slane %v7457_v4, 3 }
 0x1bc   :  { %3220 = vmatpush.bf16.msrb.mxu1 %v4138_v37 }
 0x1be   :  { %v3055_v55 = vpop.f32.mrf.mxu0 }
 0x1bf   :  { %v3056_v22 = vadd.f32 %v3055_v55, %v7768_v29 }
 0x1c0   :  { %3221 = vmatpush.bf16.msrb.mxu1 %v4118_v39 }
 0x1c4   :  { %3222 = vmatpush.bf16.msrb.mxu1 %v4098_v45 }
 0x1c6   :  { %v3057_v9 = vpop.f32.mrf.mxu0 }
 0x1c7   :  { %3223 = vmatmul.bf16.vlgmr.msrb.gmra.mxu1 %v6746_v3  ;;  %v5253_v3 = vld [vmem:[%s7871_s3 + $0x598] sm:$0xf0] }
 0x1c8   :  { %3267 = vmatpush.bf16.msra.mxu1 %v4878_v7  ;;  %v4798_v10 = vor.u32 %v5253_v3, %v4797_v62 }
 0x1cc   :  { %3268 = vmatpush.bf16.msra.mxu1 %v4858_v36 }
 0x1ce   :  { %v3107_v30 = vpop.f32.mrf.mxu0 }
 0x1cf   :  { %v3108_v34 = vadd.f32 %v3107_v30, %v3095_v5 }
 0x1d0   :  { %3269 = vmatpush.bf16.msra.mxu1 %v4838_v57 }
 0x1d4   :  { %3270 = vmatpush.bf16.msra.mxu1 %v4818_v61 }
 0x1d6   :  { %v3109_v12 = vpop.f32.mrf.mxu0 }
 0x1d8   :  { %3271 = vmatpush.bf16.msra.mxu1 %v4798_v10  ;;  %v1909_v10 = vperm.slane %v7457_v4, 4 }
 0x1dc   :  { %3272 = vmatpush.bf16.msra.mxu1 %v4778_v2 }
 0x1e0   :  { %3273 = vmatpush.bf16.msra.mxu1 %v4758_v8 }
 0x1e4   :  { %3274 = vmatpush.bf16.msra.mxu1 %v4738_v11  ;;  %v3016_v14 = vpop.f32.mrf.mxu1 }
 0x1e5   :  { %v3017_v16 = vadd.f32 %v3016_v14, %v3004_v13 }
 0x1e7   :  { %3275 = vmatmul.bf16.vlgmr.msra.gmra.mxu1 %v7377_v1  ;;  %v3280_v17 = vmax.f32 %v3017_v16, 0.0 }
 0x1e9   :  { %3285 = vst [vmem:[%s7874_s5] sm:$0xff] %v3280_v17 }
 0x1ea   :  { %v3081_v18 = vpop.f32.mrf.mxu2 }
 0x1eb   :  { %v3146_v19 = vpop.f32.mrf.mxu3 }
 0x1ec   :  { %v3018_v20 = vpop.f32.mrf.mxu1 }
 0x1f0   :  { %v3159_v21 = vpop.f32.mrf.mxu0 }
 0x1f1   :  { %v3160_v46 = vadd.f32 %v3159_v21, %v1908_v43 }
 0x1f2   :  { %v3083_v15 = vpop.f32.mrf.mxu2 }
 0x1f3   :  { %v3148_v23 = vpop.f32.mrf.mxu3 }
 0x1f4   :  { %v3068_v25 = vpop.f32.mrf.mxu1 }
 0x1f5   :  { %v3069_v26 = vadd.f32 %v3068_v25, %v3056_v22 }
 0x1f7   :  { %v3082_v1 = vadd.f32 %v3081_v18, %v3069_v26 }
 0x1f8   :  { %v3161_v28 = vpop.f32.mrf.mxu0 }
 0x1f9   :  { %v3281_v56 = vmax.f32 %v3082_v1, 0.0 }
 0x1fa   :  { %v3133_v31 = vpop.f32.mrf.mxu2 }
 0x1fb   :  { %3286 = vst [vmem:[%s7874_s5 + $0x8] sm:$0xff] %v3281_v56  ;;  %v3198_v48 = vpop.f32.mrf.mxu3 }
 0x1fc   :  { %v3070_v32 = vpop.f32.mrf.mxu1 }
 0x202   :  { %v3135_v29 = vpop.f32.mrf.mxu2 }
 0x203   :  { %v3200_v35 = vpop.f32.mrf.mxu3 }
 0x204   :  { %v3120_v54 = vpop.f32.mrf.mxu1 }
 0x205   :  { %v3121_v37 = vadd.f32 %v3120_v54, %v3108_v34 }
 0x207   :  { %v3134_v38 = vadd.f32 %v3133_v31, %v3121_v37 }
 0x209   :  { %v3147_v49 = vadd.f32 %v3146_v19, %v3134_v38 }
 0x20b   :  { %v3282_v39 = vmax.f32 %v3147_v49, 0.0  ;;  %v3185_v40 = vpop.f32.mrf.mxu2 }
 0x20c   :  { %v3122_v41 = vpop.f32.mrf.mxu1 }
 0x20d   :  { %3287 = vst [vmem:[%s7874_s5 + $0x10] sm:$0xff] %v3282_v39 }
 0x20e   :  { %v3211_v33 = vpop.f32.mrf.mxu0 }
 0x213   :  { %v3250_v42 = vpop.f32.mrf.mxu3  ;;  %v3187_v44 = vpop.f32.mrf.mxu2 }
 0x216   :  { %v3213_v45 = vpop.f32.mrf.mxu0 }
 0x21b   :  { %v3252_v7 = vpop.f32.mrf.mxu3 }
 0x224   :  { %v3172_v24 = vpop.f32.mrf.mxu1 }
 0x225   :  { %v3173_v36 = vadd.f32 %v3172_v24, %v3160_v46 }
 0x227   :  { %v3186_v50 = vadd.f32 %v3185_v40, %v3173_v36 }
 0x229   :  { %v3199_v52 = vadd.f32 %v3198_v48, %v3186_v50 }
 0x22b   :  { %v3212_v53 = vadd.f32 %v3211_v33, %v3199_v52  ;;  %v3237_v55 = vpop.f32.mrf.mxu2 }
 0x22c   :  { %v3174_v57 = vpop.f32.mrf.mxu1 }
 0x22d   :  { %v3283_v47 = vmax.f32 %v3212_v53, 0.0 }
 0x22e   :  { %v3263_v60 = vpop.f32.mrf.mxu0 }
 0x22f   :  { %3288 = vst [vmem:[%s7874_s5 + $0x18] sm:$0xff] %v3283_v47 }
 0x233   :  { %v3239_v61 = vpop.f32.mrf.mxu2 }
 0x236   :  { %v3265_v62 = vpop.f32.mrf.mxu0 }
 0x244   :  { %v3224_v3 = vpop.f32.mrf.mxu1 }
 0x245   :  { %v3225_v63 = vadd.f32 %v3224_v3, %v1909_v10 }
 0x247   :  { %v3238_v0 = vadd.f32 %v3237_v55, %v3225_v63 }
 0x249   :  { %v3251_v2 = vadd.f32 %v3250_v42, %v3238_v0 }
 0x24b   :  { %v3264_v58 = vadd.f32 %v3263_v60, %v3251_v2 }
 0x24c   :  { %v3226_v9 = vpop.f32.mrf.mxu1 }
 0x264   :  { %v3276_v6 = vpop.f32.mrf.mxu1 }
 0x265   :  { %v3277_v30 = vadd.f32 %v3276_v6, %v3264_v58 }
 0x267   :  { %v3284_v8 = vmax.f32 %v3277_v30, 0.0 }
 0x269   :  { %3289 = vst.msk [vmem:[%s7874_s5 + $0x20] sm:$0xff] %vm1306_vm1, %v3284_v8 }
 0x26c   :  { %v3278_v59 = vpop.f32.mrf.mxu1 }

</bundles_post_ra>
